<compile_context>
chip_gen: v7x
topology: tpu7x:2x2x1
jax: 0.10.0
libtpu: 0.0.40
codegen_flags: <defaults>
</compile_context>

<pallas_src>
import numpy as np
import jax
import jax.numpy as jnp
from jax.experimental import pallas as pl
from jax.experimental.pallas import tpu as pltpu

FPAD = 128   # lane-dense padded feature width


# --------------------------------------------------------------------------
# In-kernel GGNN (GRU-style) step on one batch element, packed weights.
# --------------------------------------------------------------------------
def _gru_step(adj, x, wp_ref, wA_ref, wX_ref, wh1_ref, bz_ref, br_ref, bh_ref):
    """adj: (N, N), x: (N, Fin).  Returns (N, F) float32 (F = padded width)."""
    cdt = wp_ref.dtype                       # matmul compute dtype (f32 / bf16)
    F = bz_ref.shape[-1]

    # x = proj(x); a = adj @ x   (both accumulate in f32)
    xp = jnp.dot(x.astype(cdt), wp_ref[...],
                 preferred_element_type=jnp.float32)                # (N, F)
    a = jnp.dot(adj, xp.astype(adj.dtype),
                preferred_element_type=jnp.float32)                 # (N, F)

    # Packed gate matmuls: ga = a @ [wz0|wr0|wh0], gx = xp @ [wz1|wr1]
    ga = jnp.dot(a.astype(cdt), wA_ref[...],
                 preferred_element_type=jnp.float32)                # (N, 3F)
    gx = jnp.dot(xp.astype(cdt), wX_ref[...],
                 preferred_element_type=jnp.float32)                # (N, 2F)

    # Gate math in f32; biases were pre-summed on host (b?0 + b?1).
    z = jax.nn.sigmoid(ga[:, :F] + gx[:, :F] + bz_ref[...])
    r = jax.nn.sigmoid(ga[:, F:2 * F] + gx[:, F:2 * F] + br_ref[...])
    h = jnp.tanh(ga[:, 2 * F:]
                 + jnp.dot((r * xp).astype(cdt), wh1_ref[...],
                           preferred_element_type=jnp.float32)
                 + bh_ref[...])
    return h * z + xp * (1.0 - z)


# --------------------------------------------------------------------------
# Pallas kernels
# --------------------------------------------------------------------------
def _ggnn_scorer_kernel(adj_ref, x_ref,
                        wp1, wA1, wX1, wh11, bz1, br1, bh1,
                        wps, wAs, wXs, wh1s, bzs, brs, bhs,
                        feat1_ref, score_ref):
    """feat_prop1 followed by word_scorer1, all in VMEM for one batch element."""
    adj = adj_ref[0]                      # (N, N)
    x = x_ref[0]                          # (N, Fin)
    feat1 = _gru_step(adj, x, wp1, wA1, wX1, wh11, bz1, br1, bh1)
    feat1_ref[0] = feat1.astype(feat1_ref.dtype)
    score = _gru_step(adj, feat1, wps, wAs, wXs, wh1s, bzs, brs, bhs)
    score_ref[0] = score.astype(score_ref.dtype)    # column 0 = exact score


def _gsl_ggnn_kernel(adj_ref, keep_row_ref, keep_col_ref, x_ref,
                     wp, wA, wX, wh1, bz, br, bh, out_ref):
    """GSL adjacency mask fused with feat_prop2."""
    adj = adj_ref[0]                      # (N, N)
    keep_row = keep_row_ref[0]            # (1, N)  keep[j]
    keep_col = keep_col_ref[0]            # (N, 1)  keep[i]
    # mask[i, j] = 1 if node i OR node j is kept (keep values are 0/1)
    adj_m = adj * jnp.maximum(keep_row, keep_col)
    out = _gru_step(adj_m, x_ref[0], wp, wA, wX, wh1, bz, br, bh)
    out_ref[0] = out.astype(out_ref.dtype)


# --------------------------------------------------------------------------
# pallas_call wrappers
# --------------------------------------------------------------------------
_P_KEYS = ("wp", "wA", "wX", "wh1", "bz", "br", "bh")


def _param_specs(p):
    # All packed params are 2D, grid-invariant blocks.
    return [pl.BlockSpec(p[k].shape, lambda b: (0, 0)) for k in _P_KEYS]


def _param_args(p):
    return [p[k] for k in _P_KEYS]


def ggnn_scorer_fused(adj, feat, pk1, pks):
    """Fused feat_prop1 + word_scorer1.  Returns (feat1_pad, score_pad)."""
    B, N, _ = adj.shape
    Fin = feat.shape[-1]
    F = pk1["bz"].shape[-1]

    in_specs = ([pl.BlockSpec((1, N, N), lambda b: (b, 0, 0)),
                 pl.BlockSpec((1, N, Fin), lambda b: (b, 0, 0))]
                + _param_specs(pk1) + _param_specs(pks))
    out_specs = (pl.BlockSpec((1, N, F), lambda b: (b, 0, 0)),
                 pl.BlockSpec((1, N, F), lambda b: (b, 0, 0)))
    out_shape = (jax.ShapeDtypeStruct((B, N, F), jnp.float32),
                 jax.ShapeDtypeStruct((B, N, F), jnp.float32))

    return pl.pallas_call(
        _ggnn_scorer_kernel,
        out_shape=out_shape,
        grid_spec=pltpu.PrefetchScalarGridSpec(
            num_scalar_prefetch=0, grid=(B,),
            in_specs=in_specs, out_specs=out_specs),
        compiler_params=pltpu.CompilerParams(
            dimension_semantics=("parallel",)),
    )(adj, feat, *_param_args(pk1), *_param_args(pks))


def gsl_ggnn_fused(adj, keep, feat1, pk2):
    """Fused GSL adjacency refinement + feat_prop2.  Returns padded (B,N,F)."""
    B, N, _ = adj.shape
    Fin = feat1.shape[-1]
    F = pk2["bz"].shape[-1]
    keep_row = keep.reshape(B, 1, N).astype(adj.dtype)
    keep_col = keep.reshape(B, N, 1).astype(adj.dtype)

    in_specs = ([pl.BlockSpec((1, N, N), lambda b: (b, 0, 0)),
                 pl.BlockSpec((1, 1, N), lambda b: (b, 0, 0)),
                 pl.BlockSpec((1, N, 1), lambda b: (b, 0, 0)),
                 pl.BlockSpec((1, N, Fin), lambda b: (b, 0, 0))]
                + _param_specs(pk2))
    out_spec = pl.BlockSpec((1, N, F), lambda b: (b, 0, 0))

    return pl.pallas_call(
        _gsl_ggnn_kernel,
        out_shape=jax.ShapeDtypeStruct((B, N, F), jnp.float32),
        grid_spec=pltpu.PrefetchScalarGridSpec(
            num_scalar_prefetch=0, grid=(B,),
            in_specs=in_specs, out_specs=out_spec),
        compiler_params=pltpu.CompilerParams(
            dimension_semantics=("parallel",)),
    )(adj, keep_row, keep_col, feat1, *_param_args(pk2))


# --------------------------------------------------------------------------
# Parameter init (PyTorch nn.Linear-style uniform) and packing
# --------------------------------------------------------------------------
def init_linear(key, fin, fout, bias=True):
    bound = 1.0 / np.sqrt(fin)
    kw, kb = jax.random.split(key)
    w = jax.random.uniform(kw, (fin, fout), jnp.float32, -bound, bound)
    b = (jax.random.uniform(kb, (1, fout), jnp.float32, -bound, bound)
         if bias else None)
    return w, b


def init_ggnn(key, fin, fout):
    keys = jax.random.split(key, 7)
    wp, _ = init_linear(keys[0], fin, fout, bias=False)
    params = {"wp": wp}
    for name, kk in zip(["z0", "z1", "r0", "r1", "h0", "h1"], keys[1:]):
        w, b = init_linear(kk, fout, fout)
        params["w" + name] = w
        params["b" + name] = b
    return params


def pack_ggnn_params(p, fin, fout, fpad=FPAD, fin_pad=None):
    """Zero-pad feature dims to `fpad` lanes, concat gate weights, pre-sum biases.

    Padding is exact: padded wp columns are zero -> padded xp columns are zero
    -> padded h = tanh(0) = 0 and the output blend is exactly 0 in padded
    lanes, so downstream layers (whose wp has zero padded rows) are unaffected.
    """
    fin_pad = fin if fin_pad is None else fin_pad

    def padw(w):
        return jnp.zeros((fpad, fpad), jnp.float32).at[:fout, :fout].set(w)

    def padb(b0, b1):
        return jnp.zeros((1, fpad), jnp.float32).at[:, :fout].set(b0 + b1)

    wp = jnp.zeros((fin_pad, fpad), jnp.float32).at[:fin, :fout].set(p["wp"])
    wA = jnp.concatenate([padw(p["wz0"]), padw(p["wr0"]), padw(p["wh0"])], axis=1)
    wX = jnp.concatenate([padw(p["wz1"]), padw(p["wr1"])], axis=1)
    return {"wp": wp, "wA": wA, "wX": wX, "wh1": padw(p["wh1"]),
            "bz": padb(p["bz0"], p["bz1"]),
            "br": padb(p["br0"], p["br1"]),
            "bh": padb(p["bh0"], p["bh1"])}


# --------------------------------------------------------------------------
# Full model forward (glue in plain JAX; heavy compute in two Pallas kernels)
# --------------------------------------------------------------------------
def ggnn_with_gsl_forward(adj, feat, pk1, pks, pk2, rate, output_dim,
                          compute_dtype=jnp.float32):
    # TODO(synk): dropout is inference-mode identity (deterministic forward).
    B, N, _ = adj.shape

    def cast(p):
        # Only matmul operands get the compute dtype; biases / gating stay f32.
        return {k: (v.astype(compute_dtype) if k.startswith("w") else v)
                for k, v in p.items()}

    adj_c = adj.astype(compute_dtype)
    feat_c = feat.astype(compute_dtype)

    feat1_pad, score_pad = ggnn_scorer_fused(adj_c, feat_c, cast(pk1), cast(pks))
    score = score_pad[:, :, 0]                       # (B, N), exact scorer output

    num_keep = int(rate * N)
    _, idx = jax.lax.top_k(score, num_keep)          # host-side JAX glue
    keep = jnp.zeros((B, N), jnp.float32).at[
        jnp.arange(B)[:, None], idx].set(1.0)

    out_pad = gsl_ggnn_fused(adj_c, keep, feat1_pad.astype(compute_dtype),
                             cast(pk2))
    return out_pad[:, :, :output_dim]


# --------------------------------------------------------------------------
# Pure-JAX reference (PyTorch semantics, unpacked weights) for verification
# --------------------------------------------------------------------------
def ggnn_ref(adj, x, params):
    xp = x @ params["wp"]
    a = jnp.einsum("bij,bjf->bif", adj, xp)
    z = jax.nn.sigmoid(a @ params["wz0"] + params["bz0"]
                       + xp @ params["wz1"] + params["bz1"])
    r = jax.nn.sigmoid(a @ params["wr0"] + params["br0"]
                       + xp @ params["wr1"] + params["br1"])
    h = jnp.tanh(a @ params["wh0"] + params["bh0"]
                 + (r * xp) @ params["wh1"] + params["bh1"])
    return h * z + xp * (1.0 - z)


def model_ref(adj, feat, p1, p_scorer, p2, rate):
    B, N, _ = adj.shape
    feat1 = ggnn_ref(adj, feat, p1)
    score = ggnn_ref(adj, feat1, p_scorer)[:, :, 0]
    num_keep = int(rate * N)
    _, idx = jax.lax.top_k(score, num_keep)
    keep = jnp.zeros((B, N), jnp.float32).at[jnp.arange(B)[:, None], idx].set(1.0)
    mask = jnp.maximum(keep[:, :, None], keep[:, None, :])
    return ggnn_ref(adj * mask, feat1, p2)


# --------------------------------------------------------------------------
if __name__ == "__main__":
    key = jax.random.PRNGKey(0)
    B, N = 2, 16
    input_dim, hidden_dim, output_dim = 8, 32, 32
    rate = 0.8

    k_adj, k_feat, k1, k2, k3 = jax.random.split(key, 5)

    # Symmetric binary adjacency with self-loops
    adj_rand = jax.random.uniform(k_adj, (B, N, N))
    adj = ((adj_rand + jnp.transpose(adj_rand, (0, 2, 1))) > 1.0).astype(jnp.float32)
    adj = jnp.maximum(adj, jnp.eye(N, dtype=jnp.float32)[None])

    feat = jax.random.normal(k_feat, (B, N, input_dim), jnp.float32)

    # Raw (PyTorch-equivalent) parameters, then packed/padded for the kernels.
    p1 = init_ggnn(k1, input_dim, hidden_dim)
    p_scorer = init_ggnn(k2, hidden_dim, 1)
    p2 = init_ggnn(k3, hidden_dim, output_dim)

    pk1 = pack_ggnn_params(p1, input_dim, hidden_dim)
    pks = pack_ggnn_params(p_scorer, hidden_dim, 1, fin_pad=FPAD)
    pk2 = pack_ggnn_params(p2, hidden_dim, output_dim, fin_pad=FPAD)

    # float32 path: checked against the pure-JAX PyTorch-semantics reference.
    out = ggnn_with_gsl_forward(adj, feat, pk1, pks, pk2, rate, output_dim)
    out = jax.block_until_ready(out)
    ref = jax.block_until_ready(model_ref(adj, feat, p1, p_scorer, p2, rate))

    assert out.shape == (B, N, output_dim)
    assert np.all(np.isfinite(np.asarray(out)))
    assert np.allclose(np.asarray(out), np.asarray(ref), rtol=1e-2, atol=1e-2)

    # bfloat16 matmul path (native MXU dtype on v6e/v7x); gate math stays f32.
    # Smoke-check only: near-tied scores may legitimately flip the top-k set.
    out_bf16 = jax.block_until_ready(
        ggnn_with_gsl_forward(adj, feat, pk1, pks, pk2, rate, output_dim,
                              compute_dtype=jnp.bfloat16))
    assert out_bf16.shape == (B, N, output_dim)
    assert np.all(np.isfinite(np.asarray(out_bf16)))

    print("KERNEL_OK")
</pallas_src>

<mosaic_0001>
module attributes {stable_mosaic.version = 11 : i64} {
  func.func @_ggnn_scorer_kernel(%arg0: i32, %arg1: memref<1x16x16xf32, #tpu.memory_space<vmem>>, %arg2: memref<1x16x8xf32, #tpu.memory_space<vmem>>, %arg3: memref<8x128xf32, #tpu.memory_space<vmem>>, %arg4: memref<128x384xf32, #tpu.memory_space<vmem>>, %arg5: memref<128x256xf32, #tpu.memory_space<vmem>>, %arg6: memref<128x128xf32, #tpu.memory_space<vmem>>, %arg7: memref<1x128xf32, #tpu.memory_space<vmem>>, %arg8: memref<1x128xf32, #tpu.memory_space<vmem>>, %arg9: memref<1x128xf32, #tpu.memory_space<vmem>>, %arg10: memref<128x128xf32, #tpu.memory_space<vmem>>, %arg11: memref<128x384xf32, #tpu.memory_space<vmem>>, %arg12: memref<128x256xf32, #tpu.memory_space<vmem>>, %arg13: memref<128x128xf32, #tpu.memory_space<vmem>>, %arg14: memref<1x128xf32, #tpu.memory_space<vmem>>, %arg15: memref<1x128xf32, #tpu.memory_space<vmem>>, %arg16: memref<1x128xf32, #tpu.memory_space<vmem>>, %arg17: memref<1x16x128xf32, #tpu.memory_space<vmem>>, %arg18: memref<1x16x128xf32, #tpu.memory_space<vmem>>) attributes {dimension_semantics = [#tpu.dimension_semantics<parallel>], iteration_bounds = array<i64: 2>, scalar_prefetch = 0 : i64, scratch_operands = 0 : i64, tpu.core_type = #tpu.core_type<tc>, window_params = [{transform_indices = @transform_0, window_bounds = array<i64: 1, 16, 16>}, {transform_indices = @transform_1, window_bounds = array<i64: 1, 16, 8>}, {pipeline_mode = #tpu.pipeline_mode<synchronous>, transform_indices = @transform_2, window_bounds = array<i64: 8, 128>}, {pipeline_mode = #tpu.pipeline_mode<synchronous>, transform_indices = @transform_3, window_bounds = array<i64: 128, 384>}, {pipeline_mode = #tpu.pipeline_mode<synchronous>, transform_indices = @transform_4, window_bounds = array<i64: 128, 256>}, {pipeline_mode = #tpu.pipeline_mode<synchronous>, transform_indices = @transform_5, window_bounds = array<i64: 128, 128>}, {pipeline_mode = #tpu.pipeline_mode<synchronous>, transform_indices = @transform_6, window_bounds = array<i64: 1, 128>}, {pipeline_mode = #tpu.pipeline_mode<synchronous>, transform_indices = @transform_7, window_bounds = array<i64: 1, 128>}, {pipeline_mode = #tpu.pipeline_mode<synchronous>, transform_indices = @transform_8, window_bounds = array<i64: 1, 128>}, {pipeline_mode = #tpu.pipeline_mode<synchronous>, transform_indices = @transform_9, window_bounds = array<i64: 128, 128>}, {pipeline_mode = #tpu.pipeline_mode<synchronous>, transform_indices = @transform_10, window_bounds = array<i64: 128, 384>}, {pipeline_mode = #tpu.pipeline_mode<synchronous>, transform_indices = @transform_11, window_bounds = array<i64: 128, 256>}, {pipeline_mode = #tpu.pipeline_mode<synchronous>, transform_indices = @transform_12, window_bounds = array<i64: 128, 128>}, {pipeline_mode = #tpu.pipeline_mode<synchronous>, transform_indices = @transform_13, window_bounds = array<i64: 1, 128>}, {pipeline_mode = #tpu.pipeline_mode<synchronous>, transform_indices = @transform_14, window_bounds = array<i64: 1, 128>}, {pipeline_mode = #tpu.pipeline_mode<synchronous>, transform_indices = @transform_15, window_bounds = array<i64: 1, 128>}, {transform_indices = @transform_16, window_bounds = array<i64: 1, 16, 128>}, {transform_indices = @transform_17, window_bounds = array<i64: 1, 16, 128>}]} {
    %c0 = arith.constant 0 : index
    %c0_0 = arith.constant 0 : index
    %c0_1 = arith.constant 0 : index
    %0 = vector.load %arg1[%c0, %c0_0, %c0_1] : memref<1x16x16xf32, #tpu.memory_space<vmem>>, vector<1x16x16xf32>
    %1 = vector.shape_cast %0 : vector<1x16x16xf32> to vector<16x16xf32>
    %c0_2 = arith.constant 0 : index
    %c0_3 = arith.constant 0 : index
    %c0_4 = arith.constant 0 : index
    %2 = vector.load %arg2[%c0_2, %c0_3, %c0_4] : memref<1x16x8xf32, #tpu.memory_space<vmem>>, vector<1x16x8xf32>
    %3 = vector.shape_cast %2 : vector<1x16x8xf32> to vector<16x8xf32>
    %c0_5 = arith.constant 0 : index
    %c0_6 = arith.constant 0 : index
    %4 = vector.load %arg3[%c0_5, %c0_6] : memref<8x128xf32, #tpu.memory_space<vmem>>, vector<8x128xf32>
    %cst = arith.constant dense<0.000000e+00> : vector<16x128xf32>
    %5 = tpu.matmul %3, %4, %cst {dimension_numbers = #tpu.dot_dimension_numbers<[1], [0], [0], [1], [0, 0, 1, 1], [], []>} : vector<16x8xf32>, vector<8x128xf32>, vector<16x128xf32> -> vector<16x128xf32>
    %cst_7 = arith.constant dense<0.000000e+00> : vector<16x128xf32>
    %6 = tpu.matmul %1, %5, %cst_7 {dimension_numbers = #tpu.dot_dimension_numbers<[1], [0], [0], [1], [0, 0, 1, 1], [], []>} : vector<16x16xf32>, vector<16x128xf32>, vector<16x128xf32> -> vector<16x128xf32>
    %c0_8 = arith.constant 0 : index
    %c0_9 = arith.constant 0 : index
    %7 = vector.load %arg4[%c0_8, %c0_9] : memref<128x384xf32, #tpu.memory_space<vmem>>, vector<128x384xf32>
    %cst_10 = arith.constant dense<0.000000e+00> : vector<16x384xf32>
    %8 = tpu.matmul %6, %7, %cst_10 {dimension_numbers = #tpu.dot_dimension_numbers<[1], [0], [0], [1], [0, 0, 1, 1], [], []>} : vector<16x128xf32>, vector<128x384xf32>, vector<16x384xf32> -> vector<16x384xf32>
    %c0_11 = arith.constant 0 : index
    %c0_12 = arith.constant 0 : index
    %9 = vector.load %arg5[%c0_11, %c0_12] : memref<128x256xf32, #tpu.memory_space<vmem>>, vector<128x256xf32>
    %cst_13 = arith.constant dense<0.000000e+00> : vector<16x256xf32>
    %10 = tpu.matmul %5, %9, %cst_13 {dimension_numbers = #tpu.dot_dimension_numbers<[1], [0], [0], [1], [0, 0, 1, 1], [], []>} : vector<16x128xf32>, vector<128x256xf32>, vector<16x256xf32> -> vector<16x256xf32>
    %11 = vector.extract_strided_slice %8 {offsets = [0, 0], sizes = [16, 128], strides = [1, 1]} : vector<16x384xf32> to vector<16x128xf32>
    %12 = vector.extract_strided_slice %10 {offsets = [0, 0], sizes = [16, 128], strides = [1, 1]} : vector<16x256xf32> to vector<16x128xf32>
    %13 = arith.addf %11, %12 : vector<16x128xf32>
    %c0_14 = arith.constant 0 : index
    %c0_15 = arith.constant 0 : index
    %14 = vector.load %arg7[%c0_14, %c0_15] : memref<1x128xf32, #tpu.memory_space<vmem>>, vector<1x128xf32>
    %15 = vector.broadcast %14 : vector<1x128xf32> to vector<16x128xf32>
    %16 = arith.addf %13, %15 : vector<16x128xf32>
    %17 = arith.negf %16 : vector<16x128xf32>
    %18 = math.exp %17 : vector<16x128xf32>
    %cst_16 = arith.constant 1.000000e+00 : f32
    %19 = vector.broadcast %cst_16 : f32 to vector<16x128xf32>
    %20 = arith.addf %19, %18 : vector<16x128xf32>
    %21 = arith.divf %19, %20 : vector<16x128xf32>
    %22 = vector.extract_strided_slice %8 {offsets = [0, 128], sizes = [16, 128], strides = [1, 1]} : vector<16x384xf32> to vector<16x128xf32>
    %23 = vector.extract_strided_slice %10 {offsets = [0, 128], sizes = [16, 128], strides = [1, 1]} : vector<16x256xf32> to vector<16x128xf32>
    %24 = arith.addf %22, %23 : vector<16x128xf32>
    %c0_17 = arith.constant 0 : index
    %c0_18 = arith.constant 0 : index
    %25 = vector.load %arg8[%c0_17, %c0_18] : memref<1x128xf32, #tpu.memory_space<vmem>>, vector<1x128xf32>
    %26 = vector.broadcast %25 : vector<1x128xf32> to vector<16x128xf32>
    %27 = arith.addf %24, %26 : vector<16x128xf32>
    %28 = arith.negf %27 : vector<16x128xf32>
    %29 = math.exp %28 : vector<16x128xf32>
    %cst_19 = arith.constant 1.000000e+00 : f32
    %30 = vector.broadcast %cst_19 : f32 to vector<16x128xf32>
    %31 = arith.addf %30, %29 : vector<16x128xf32>
    %32 = arith.divf %30, %31 : vector<16x128xf32>
    %33 = vector.extract_strided_slice %8 {offsets = [0, 256], sizes = [16, 128], strides = [1, 1]} : vector<16x384xf32> to vector<16x128xf32>
    %34 = arith.mulf %32, %5 : vector<16x128xf32>
    %c0_20 = arith.constant 0 : index
    %c0_21 = arith.constant 0 : index
    %35 = vector.load %arg6[%c0_20, %c0_21] : memref<128x128xf32, #tpu.memory_space<vmem>>, vector<128x128xf32>
    %cst_22 = arith.constant dense<0.000000e+00> : vector<16x128xf32>
    %36 = tpu.matmul %34, %35, %cst_22 {dimension_numbers = #tpu.dot_dimension_numbers<[1], [0], [0], [1], [0, 0, 1, 1], [], []>} : vector<16x128xf32>, vector<128x128xf32>, vector<16x128xf32> -> vector<16x128xf32>
    %37 = arith.addf %33, %36 : vector<16x128xf32>
    %c0_23 = arith.constant 0 : index
    %c0_24 = arith.constant 0 : index
    %38 = vector.load %arg9[%c0_23, %c0_24] : memref<1x128xf32, #tpu.memory_space<vmem>>, vector<1x128xf32>
    %39 = vector.broadcast %38 : vector<1x128xf32> to vector<16x128xf32>
    %40 = arith.addf %37, %39 : vector<16x128xf32>
    %41 = math.tanh %40 : vector<16x128xf32>
    %42 = arith.mulf %41, %21 : vector<16x128xf32>
    %cst_25 = arith.constant 1.000000e+00 : f32
    %43 = vector.broadcast %cst_25 : f32 to vector<16x128xf32>
    %44 = arith.subf %43, %21 : vector<16x128xf32>
    %45 = arith.mulf %5, %44 : vector<16x128xf32>
    %46 = arith.addf %42, %45 : vector<16x128xf32>
    %c0_26 = arith.constant 0 : index
    %c0_27 = arith.constant 0 : index
    %c0_28 = arith.constant 0 : index
    %47 = vector.load %arg17[%c0_26, %c0_27, %c0_28] : memref<1x16x128xf32, #tpu.memory_space<vmem>>, vector<1x16x128xf32>
    %48 = vector.shape_cast %47 : vector<1x16x128xf32> to vector<16x128xf32>
    %49 = vector.shape_cast %46 : vector<16x128xf32> to vector<1x16x128xf32>
    tpu.vector_store %arg17[%c0_26, %c0_27, %c0_28], %49 {strides = array<i32>} : memref<1x16x128xf32, #tpu.memory_space<vmem>>, vector<1x16x128xf32>,
    %c0_29 = arith.constant 0 : index
    %c0_30 = arith.constant 0 : index
    %50 = vector.load %arg10[%c0_29, %c0_30] : memref<128x128xf32, #tpu.memory_space<vmem>>, vector<128x128xf32>
    %cst_31 = arith.constant dense<0.000000e+00> : vector<16x128xf32>
    %51 = tpu.matmul %46, %50, %cst_31 {dimension_numbers = #tpu.dot_dimension_numbers<[1], [0], [0], [1], [0, 0, 1, 1], [], []>} : vector<16x128xf32>, vector<128x128xf32>, vector<16x128xf32> -> vector<16x128xf32>
    %cst_32 = arith.constant dense<0.000000e+00> : vector<16x128xf32>
    %52 = tpu.matmul %1, %51, %cst_32 {dimension_numbers = #tpu.dot_dimension_numbers<[1], [0], [0], [1], [0, 0, 1, 1], [], []>} : vector<16x16xf32>, vector<16x128xf32>, vector<16x128xf32> -> vector<16x128xf32>
    %c0_33 = arith.constant 0 : index
    %c0_34 = arith.constant 0 : index
    %53 = vector.load %arg11[%c0_33, %c0_34] : memref<128x384xf32, #tpu.memory_space<vmem>>, vector<128x384xf32>
    %cst_35 = arith.constant dense<0.000000e+00> : vector<16x384xf32>
    %54 = tpu.matmul %52, %53, %cst_35 {dimension_numbers = #tpu.dot_dimension_numbers<[1], [0], [0], [1], [0, 0, 1, 1], [], []>} : vector<16x128xf32>, vector<128x384xf32>, vector<16x384xf32> -> vector<16x384xf32>
    %c0_36 = arith.constant 0 : index
    %c0_37 = arith.constant 0 : index
    %55 = vector.load %arg12[%c0_36, %c0_37] : memref<128x256xf32, #tpu.memory_space<vmem>>, vector<128x256xf32>
    %cst_38 = arith.constant dense<0.000000e+00> : vector<16x256xf32>
    %56 = tpu.matmul %51, %55, %cst_38 {dimension_numbers = #tpu.dot_dimension_numbers<[1], [0], [0], [1], [0, 0, 1, 1], [], []>} : vector<16x128xf32>, vector<128x256xf32>, vector<16x256xf32> -> vector<16x256xf32>
    %57 = vector.extract_strided_slice %54 {offsets = [0, 0], sizes = [16, 128], strides = [1, 1]} : vector<16x384xf32> to vector<16x128xf32>
    %58 = vector.extract_strided_slice %56 {offsets = [0, 0], sizes = [16, 128], strides = [1, 1]} : vector<16x256xf32> to vector<16x128xf32>
    %59 = arith.addf %57, %58 : vector<16x128xf32>
    %c0_39 = arith.constant 0 : index
    %c0_40 = arith.constant 0 : index
    %60 = vector.load %arg14[%c0_39, %c0_40] : memref<1x128xf32, #tpu.memory_space<vmem>>, vector<1x128xf32>
    %61 = vector.broadcast %60 : vector<1x128xf32> to vector<16x128xf32>
    %62 = arith.addf %59, %61 : vector<16x128xf32>
    %63 = arith.negf %62 : vector<16x128xf32>
    %64 = math.exp %63 : vector<16x128xf32>
    %cst_41 = arith.constant 1.000000e+00 : f32
    %65 = vector.broadcast %cst_41 : f32 to vector<16x128xf32>
    %66 = arith.addf %65, %64 : vector<16x128xf32>
    %67 = arith.divf %65, %66 : vector<16x128xf32>
    %68 = vector.extract_strided_slice %54 {offsets = [0, 128], sizes = [16, 128], strides = [1, 1]} : vector<16x384xf32> to vector<16x128xf32>
    %69 = vector.extract_strided_slice %56 {offsets = [0, 128], sizes = [16, 128], strides = [1, 1]} : vector<16x256xf32> to vector<16x128xf32>
    %70 = arith.addf %68, %69 : vector<16x128xf32>
    %c0_42 = arith.constant 0 : index
    %c0_43 = arith.constant 0 : index
    %71 = vector.load %arg15[%c0_42, %c0_43] : memref<1x128xf32, #tpu.memory_space<vmem>>, vector<1x128xf32>
    %72 = vector.broadcast %71 : vector<1x128xf32> to vector<16x128xf32>
    %73 = arith.addf %70, %72 : vector<16x128xf32>
    %74 = arith.negf %73 : vector<16x128xf32>
    %75 = math.exp %74 : vector<16x128xf32>
    %cst_44 = arith.constant 1.000000e+00 : f32
    %76 = vector.broadcast %cst_44 : f32 to vector<16x128xf32>
    %77 = arith.addf %76, %75 : vector<16x128xf32>
    %78 = arith.divf %76, %77 : vector<16x128xf32>
    %79 = vector.extract_strided_slice %54 {offsets = [0, 256], sizes = [16, 128], strides = [1, 1]} : vector<16x384xf32> to vector<16x128xf32>
    %80 = arith.mulf %78, %51 : vector<16x128xf32>
    %c0_45 = arith.constant 0 : index
    %c0_46 = arith.constant 0 : index
    %81 = vector.load %arg13[%c0_45, %c0_46] : memref<128x128xf32, #tpu.memory_space<vmem>>, vector<128x128xf32>
    %cst_47 = arith.constant dense<0.000000e+00> : vector<16x128xf32>
    %82 = tpu.matmul %80, %81, %cst_47 {dimension_numbers = #tpu.dot_dimension_numbers<[1], [0], [0], [1], [0, 0, 1, 1], [], []>} : vector<16x128xf32>, vector<128x128xf32>, vector<16x128xf32> -> vector<16x128xf32>
    %83 = arith.addf %79, %82 : vector<16x128xf32>
    %c0_48 = arith.constant 0 : index
    %c0_49 = arith.constant 0 : index
    %84 = vector.load %arg16[%c0_48, %c0_49] : memref<1x128xf32, #tpu.memory_space<vmem>>, vector<1x128xf32>
    %85 = vector.broadcast %84 : vector<1x128xf32> to vector<16x128xf32>
    %86 = arith.addf %83, %85 : vector<16x128xf32>
    %87 = math.tanh %86 : vector<16x128xf32>
    %88 = arith.mulf %87, %67 : vector<16x128xf32>
    %cst_50 = arith.constant 1.000000e+00 : f32
    %89 = vector.broadcast %cst_50 : f32 to vector<16x128xf32>
    %90 = arith.subf %89, %67 : vector<16x128xf32>
    %91 = arith.mulf %51, %90 : vector<16x128xf32>
    %92 = arith.addf %88, %91 : vector<16x128xf32>
    %c0_51 = arith.constant 0 : index
    %c0_52 = arith.constant 0 : index
    %c0_53 = arith.constant 0 : index
    %93 = vector.load %arg18[%c0_51, %c0_52, %c0_53] : memref<1x16x128xf32, #tpu.memory_space<vmem>>, vector<1x16x128xf32>
    %94 = vector.shape_cast %93 : vector<1x16x128xf32> to vector<16x128xf32>
    %95 = vector.shape_cast %92 : vector<16x128xf32> to vector<1x16x128xf32>
    tpu.vector_store %arg18[%c0_51, %c0_52, %c0_53], %95 {strides = array<i32>} : memref<1x16x128xf32, #tpu.memory_space<vmem>>, vector<1x16x128xf32>,
    return
  }
  func.func @transform_0(%arg0: i32) -> (i32, i32, i32) {
    %c0_i32 = arith.constant 0 : i32
    %c0_i32_0 = arith.constant 0 : i32
    %c0_i32_1 = arith.constant 0 : i32
    return %arg0, %c0_i32, %c0_i32_0 : i32, i32, i32
  }
  func.func @transform_1(%arg0: i32) -> (i32, i32, i32) {
    %c0_i32 = arith.constant 0 : i32
    %c0_i32_0 = arith.constant 0 : i32
    %c0_i32_1 = arith.constant 0 : i32
    return %arg0, %c0_i32, %c0_i32_0 : i32, i32, i32
  }
  func.func @transform_2(%arg0: i32) -> (i32, i32) {
    %c0_i32 = arith.constant 0 : i32
    %c0_i32_0 = arith.constant 0 : i32
    %c0_i32_1 = arith.constant 0 : i32
    return %c0_i32, %c0_i32_0 : i32, i32
  }
  func.func @transform_3(%arg0: i32) -> (i32, i32) {
    %c0_i32 = arith.constant 0 : i32
    %c0_i32_0 = arith.constant 0 : i32
    %c0_i32_1 = arith.constant 0 : i32
    return %c0_i32, %c0_i32_0 : i32, i32
  }
  func.func @transform_4(%arg0: i32) -> (i32, i32) {
    %c0_i32 = arith.constant 0 : i32
    %c0_i32_0 = arith.constant 0 : i32
    %c0_i32_1 = arith.constant 0 : i32
    return %c0_i32, %c0_i32_0 : i32, i32
  }
  func.func @transform_5(%arg0: i32) -> (i32, i32) {
    %c0_i32 = arith.constant 0 : i32
    %c0_i32_0 = arith.constant 0 : i32
    %c0_i32_1 = arith.constant 0 : i32
    return %c0_i32, %c0_i32_0 : i32, i32
  }
  func.func @transform_6(%arg0: i32) -> (i32, i32) {
    %c0_i32 = arith.constant 0 : i32
    %c0_i32_0 = arith.constant 0 : i32
    %c0_i32_1 = arith.constant 0 : i32
    return %c0_i32, %c0_i32_0 : i32, i32
  }
  func.func @transform_7(%arg0: i32) -> (i32, i32) {
    %c0_i32 = arith.constant 0 : i32
    %c0_i32_0 = arith.constant 0 : i32
    %c0_i32_1 = arith.constant 0 : i32
    return %c0_i32, %c0_i32_0 : i32, i32
  }
  func.func @transform_8(%arg0: i32) -> (i32, i32) {
    %c0_i32 = arith.constant 0 : i32
    %c0_i32_0 = arith.constant 0 : i32
    %c0_i32_1 = arith.constant 0 : i32
    return %c0_i32, %c0_i32_0 : i32, i32
  }
  func.func @transform_9(%arg0: i32) -> (i32, i32) {
    %c0_i32 = arith.constant 0 : i32
    %c0_i32_0 = arith.constant 0 : i32
    %c0_i32_1 = arith.constant 0 : i32
    return %c0_i32, %c0_i32_0 : i32, i32
  }
  func.func @transform_10(%arg0: i32) -> (i32, i32) {
    %c0_i32 = arith.constant 0 : i32
    %c0_i32_0 = arith.constant 0 : i32
    %c0_i32_1 = arith.constant 0 : i32
    return %c0_i32, %c0_i32_0 : i32, i32
  }
  func.func @transform_11(%arg0: i32) -> (i32, i32) {
    %c0_i32 = arith.constant 0 : i32
    %c0_i32_0 = arith.constant 0 : i32
    %c0_i32_1 = arith.constant 0 : i32
    return %c0_i32, %c0_i32_0 : i32, i32
  }
  func.func @transform_12(%arg0: i32) -> (i32, i32) {
    %c0_i32 = arith.constant 0 : i32
    %c0_i32_0 = arith.constant 0 : i32
    %c0_i32_1 = arith.constant 0 : i32
    return %c0_i32, %c0_i32_0 : i32, i32
  }
  func.func @transform_13(%arg0: i32) -> (i32, i32) {
    %c0_i32 = arith.constant 0 : i32
    %c0_i32_0 = arith.constant 0 : i32
    %c0_i32_1 = arith.constant 0 : i32
    return %c0_i32, %c0_i32_0 : i32, i32
  }
  func.func @transform_14(%arg0: i32) -> (i32, i32) {
    %c0_i32 = arith.constant 0 : i32
    %c0_i32_0 = arith.constant 0 : i32
    %c0_i32_1 = arith.constant 0 : i32
    return %c0_i32, %c0_i32_0 : i32, i32
  }
  func.func @transform_15(%arg0: i32) -> (i32, i32) {
    %c0_i32 = arith.constant 0 : i32
    %c0_i32_0 = arith.constant 0 : i32
    %c0_i32_1 = arith.constant 0 : i32
    return %c0_i32, %c0_i32_0 : i32, i32
  }
  func.func @transform_16(%arg0: i32) -> (i32, i32, i32) {
    %c0_i32 = arith.constant 0 : i32
    %c0_i32_0 = arith.constant 0 : i32
    %c0_i32_1 = arith.constant 0 : i32
    return %arg0, %c0_i32, %c0_i32_0 : i32, i32, i32
  }
  func.func @transform_17(%arg0: i32) -> (i32, i32, i32) {
    %c0_i32 = arith.constant 0 : i32
    %c0_i32_0 = arith.constant 0 : i32
    %c0_i32_1 = arith.constant 0 : i32
    return %arg0, %c0_i32, %c0_i32_0 : i32, i32, i32
  }
}

</mosaic_0001>

<bundles_post_ra>
// kernel: tpu_custom_call.1
= control target key start
LH: loop header
LB: loop body
LE: loop exit
PB: predicated region body
PF: predicated region fallthrough
CT: control target
= control target key end

     0   :  { %s3825_s0 = inlined_call_operand.vmem [shape: f32[2,16,16], index: 0, kind: input, shape index: {}]   ;;  %s3826_s1 = inlined_call_operand.vmem [shape: f32[2,16,8], index: 1, kind: input, shape index: {}]   ;;  %s3827_s2 = inlined_call_operand.vmem [shape: f32[8,128], index: 2, kind: input, shape index: {}]   ;;  %s3828_s3 = inlined_call_operand.hbm [shape: f32[128,384], index: 3, kind: input, shape index: {}]   ;;  %s3829_s4 = inlined_call_operand.hbm [shape: f32[128,256], index: 4, kind: input, shape index: {}]   ;;  %s3830_s5 = inlined_call_operand.hbm [shape: f32[128,128], index: 5, kind: input, shape index: {}]   ;;  %s3831_s6 = inlined_call_operand.vmem [shape: f32[1,128], index: 6, kind: input, shape index: {}]   ;;  %s3832_s7 = inlined_call_operand.vmem [shape: f32[1,128], index: 7, kind: input, shape index: {}]   ;;  %s3833_s8 = inlined_call_operand.vmem [shape: f32[1,128], index: 8, kind: input, shape index: {}]   ;;  %s3834_s9 = inlined_call_operand.hbm [shape: f32[128,128], index: 9, kind: input, shape index: {}]   ;;  %s3835_s10 = inlined_call_operand.hbm [shape: f32[128,384], index: 10, kind: input, shape index: {}]   ;;  %s3836_s11 = inlined_call_operand.hbm [shape: f32[128,256], index: 11, kind: input, shape index: {}]   ;;  %s3837_s12 = inlined_call_operand.hbm [shape: f32[128,128], index: 12, kind: input, shape index: {}]   ;;  %s3838_s13 = inlined_call_operand.vmem [shape: f32[1,128], index: 13, kind: input, shape index: {}]   ;;  %s3839_s14 = inlined_call_operand.vmem [shape: f32[1,128], index: 14, kind: input, shape index: {}]   ;;  %s3840_s15 = inlined_call_operand.vmem [shape: f32[1,128], index: 15, kind: input, shape index: {}]   ;;  %s3841_s16 = inlined_call_operand.hbm [shape: f32[2,16,128], index: 16, kind: output, shape index: {0}]   ;;  %s3842_s17 = inlined_call_operand.hbm [shape: f32[2,16,128], index: 17, kind: output, shape index: {1}]  }
   0x1   :  { %3859 = sst [smem:[#allocation30_spill]] %s3825_s0 }
   0x2   :  { %3860 = sst [smem:[#allocation31_spill]] %s3826_s1 }
   0x3   :  { %3861 = sst [smem:[#allocation32_spill]] %s3838_s13 }
   0x4   :  { %3862 = sst [smem:[#allocation33_spill]] %s3839_s14 }
   0x5   :  { %3863 = sst [smem:[#allocation34_spill]] %s3840_s15 }
   0x6   :  { %3864 = sst [smem:[#allocation35_spill]] %s3841_s16 }
   0x7   :  { %3865 = sst [smem:[#allocation36_spill]] %s3842_s17 }
   0x8   :  { %23 = vsyncpa [#allocation3], 0 }
   0x9   :  { %24 = vsyncpa [#allocation6], 0 }
   0xa   :  { %25 = vsyncpa [#allocation9], 0 }
   0xb   :  { %26 = vsyncpa [#allocation12], 0 }
   0xc   :  { %27 = vsyncpa [#allocation4], 0 }
   0xd   :  { %29 = vsyncpa [#allocation4 + $0x1], 0 }
   0xe   :  { %30 = vsyncpa [#allocation16], 0 }
   0xf   :  { %32 = vsyncpa [#allocation16 + $0x1], 0  ;;  %s3406_s24 = smov 0   ;;  %s3408_s25 = smov 0  }
  0x10   :  { %s3410_s26 = smov 0   ;;  %s3412_s27 = smov 0  }
  0x11 LB: > { %3866 = sst [smem:[#allocation23_spill]] %s3284_s24  ;;  %s3427_s28 = sadd.s32 4294967295, %s3296_s27   ;;  %s3296_s27 = sphi %s3412_s27, %s3902_s27   ;;  %s3292_s26 = sphi %s3410_s26, %s3904_s26   ;;  %s3288_s25 = sphi %s3408_s25, %s3906_s25   ;;  %s3284_s24 = sphi %s3406_s24, %s3905_s24  }
  0x12   : > { %3867 = sst [smem:[#allocation24_spill]] %s3292_s26  ;;  %s2167_s29 = sadd.s32 4294967294, %s3296_s27  }
  0x13   : > { %3868 = sst [smem:[#allocation25_spill]] %s3296_s27  ;;  %s3431_s0 = sadd.s32 1, %s3296_s27  }
  0x14   : > { %3869 = sst [smem:[#allocation26_spill]] %s3431_s0  ;;  %s391_s30 = sadd.s32 1, %s3292_s26 }
  0x15   : > { %s388_s18 = ssub.s32 %s3296_s27, %s3431_s0  ;;  %p401_p0 = scmp.ne.s32.totalorder %s3292_s26, %s3288_s25 }
  0x16   : > { %p389_p1 = scmp.eq.s32.totalorder %s388_s18, 0  ;;  %p402_p2 = scmp.eq.s32.totalorder %s3427_s28, 1 }
  0x17   : > { %p407_p3 = scmp.ne.s32.totalorder %s3288_s25, %s3284_s24  ;;  %p408_p4 = scmp.eq.s32.totalorder %s2167_s29, 1 }
  0x18   : > { %s3442_s19 = scalar_select %p389_p1, %s3292_s26, %s391_s30  }
  0x19   : > { %p3444_p5 = por %p402_p2, %p401_p0  ;;  %p3448_p6 = por %p408_p4, %p407_p3 }
  0x1a   : > { %3870 = sst [smem:[#allocation27_spill]] %s3442_s19  ;;  %p2168_p7 = scmp.ge.s32.totalorder %s3296_s27, 1 }
  0x1b   : > { %s3871_s1 = scalar_select %p3444_p5, 1, 0 }
  0x1c   : > { %s3873_s20 = scalar_select %p3448_p6, 1, 0 }
  0x1d   : > { %3872 = sst [smem:[#allocation28_spill]] %s3871_s1  ;;  %p441_p8 = scmp.lt.s32.totalorder %s3296_s27, 3 }
  0x1e   : > { %3874 = sst [smem:[#allocation29_spill]] %s3873_s20  ;;  %p3850_p9 = scmp.eq.s32.totalorder %s3427_s28, 0 }
  0x1f   : > { %p3455_p10 = pnand %p2168_p7, %p441_p8  ;;  %s3298_s22 = smov [#allocation5]  }
  0x20   : > { %s469_s23 = sshll.u32 %s3298_s22, 4  ;;  %s3299_s30 = smov [#allocation8]   ;;  %s470_s23 = int_to_ptr.vmem [resolvable:$true] %s469_s23 }
  0x21   : > { %s3875_s21 = scalar_select %p3455_p10, 1, 0 }
  0x22   : > { %p2858_p11 = pneg %p3455_p10  ;;  %s504_s18 = sshll.u32 %s3299_s30, 4  ;;  %s505_s18 = int_to_ptr.vmem [resolvable:$true] %s504_s18 }
  0x23   : > { %s2990_s0 = scalar_lea.hbm %s3829_s4, 4096 }
  0x24   : > { %p3463_p12 = pnand %p3850_p9, %p2858_p11  ;;  %p2991_p13 = scmp.ne.s32.totalorder %s3829_s4, %s2990_s0 }
  0x25   : > { %p2997_p3 = scmp.lt.u32.totalorder %s2990_s0, %s3829_s4 }
  0x26   : > { %p3475_p0 = pneg %p3463_p12 }
  0x28   : > { %p2993_p1 = pnand %p3475_p0, %p2991_p13 }
  0x2a   : > { %p2994_p2 = pneg %p2993_p1 }
  0x2c   : > { %p2999_p4 = pnand %p2997_p3, %p2994_p2 }
  0x2e   : > { %3002 = shalt.err (!%p2999_p4)
}
  0x2f   : > { %s3003_s26 = scalar_lea.vmem %s470_s23, 4096  ;;  %p3011_p9 = scmp.lt.s32.totalorder %s470_s23, %s470_s23 }
  0x30   : > { %p3004_p7 = scmp.ne.s32.totalorder %s470_s23, %s3003_s26  ;;  %p3012_p6 = scmp.lt.s32.totalorder %s3003_s26, %s3003_s26 }
  0x32   : > { %p3006_p8 = pnand %p3004_p7, %p3475_p0  ;;  %p3013_p5 = por %p3012_p6, %p3011_p9 }
  0x34   : > { %p3007_p11 = pneg %p3006_p8 }
  0x36   : > { %p3014_p10 = pnand %p3013_p5, %p3007_p11 }
  0x38   : > { %3017 = shalt.err (!%p3014_p10)
}
  0x39   : > { %s3300_s24 = smov 256   ;;  %s3301_s19 = smov 16  }
  0x3a   : > { %2864 = dma.hbm_to_vmem [thread:$0]  (!%p3463_p12), %s3829_s4, 4096, %s470_s23, [#allocation6], %s3300_s24, %s3300_s24, %s3301_s19  }
  0x3b   : > { %s3302_s0 = smov [#allocation11]   ;;  %s3018_s15 = scalar_lea.hbm %s3834_s9, 2048 }
  0x3c   : > { %s530_s20 = sshll.u32 %s3302_s0, 4  ;;  %p3019_p5 = scmp.ne.s32.totalorder %s3834_s9, %s3018_s15  ;;  %s531_s20 = int_to_ptr.vmem [resolvable:$true] %s530_s20 }
  0x3d   : > { %p3025_p10 = scmp.lt.u32.totalorder %s3018_s15, %s3834_s9 }
  0x3e   : > { %p3021_p6 = pnand %p3019_p5, %p3475_p0 }
  0x40   : > { %p3022_p9 = pneg %p3021_p6 }
  0x42   : > { %p3027_p13 = pnand %p3025_p10, %p3022_p9 }
  0x44   : > { %3030 = shalt.err (!%p3027_p13)
}
  0x45   : > { %s3031_s23 = scalar_lea.vmem %s505_s18, 2048  ;;  %p3039_p4 = scmp.lt.s32.totalorder %s505_s18, %s505_s18 }
  0x46   : > { %p3032_p1 = scmp.ne.s32.totalorder %s505_s18, %s3031_s23  ;;  %p3040_p7 = scmp.lt.s32.totalorder %s3031_s23, %s3031_s23 }
  0x48   : > { %p3034_p2 = pnand %p3032_p1, %p3475_p0  ;;  %p3041_p8 = por %p3040_p7, %p3039_p4 }
  0x4a   : > { %p3035_p3 = pneg %p3034_p2 }
  0x4c   : > { %p3042_p11 = pnand %p3041_p8, %p3035_p3 }
  0x4e   : > { %3045 = shalt.err (!%p3042_p11)
}
  0x4f   : > { %s3856_s16 = smov 128   ;;  %s3858_s1 = smov 8  }
  0x50   : > { %2870 = dma.hbm_to_vmem [thread:$0]  (!%p3463_p12), %s3834_s9, 2048, %s505_s18, [#allocation9], %s3856_s16, %s3856_s16, %s3858_s1  }
  0x51   : > { %s3046_s27 = scalar_lea.hbm %s3836_s11, 4096 }
  0x52   : > { %p3047_p5 = scmp.ne.s32.totalorder %s3836_s11, %s3046_s27  ;;  %p3053_p10 = scmp.lt.u32.totalorder %s3046_s27, %s3836_s11 }
  0x54   : > { %p3049_p6 = pnand %p3047_p5, %p3475_p0 }
  0x56   : > { %p3050_p9 = pneg %p3049_p6 }
  0x58   : > { %p3055_p13 = pnand %p3053_p10, %p3050_p9 }
  0x5a   : > { %3058 = shalt.err (!%p3055_p13)
}
  0x5b   : > { %s3059_s13 = scalar_lea.vmem %s531_s20, 4096  ;;  %p3067_p4 = scmp.lt.s32.totalorder %s531_s20, %s531_s20 }
  0x5c   : > { %p3060_p1 = scmp.ne.s32.totalorder %s531_s20, %s3059_s13  ;;  %p3068_p7 = scmp.lt.s32.totalorder %s3059_s13, %s3059_s13 }
  0x5e   : > { %p3062_p2 = pnand %p3060_p1, %p3475_p0  ;;  %p3069_p8 = por %p3068_p7, %p3067_p4 }
  0x60   : > { %p3063_p3 = pneg %p3062_p2 }
  0x62   : > { %p3070_p11 = pnand %p3069_p8, %p3063_p3 }
  0x64   : > { %3073 = shalt.err (!%p3070_p11)
}
  0x65   : > { %2876 = dma.hbm_to_vmem [thread:$0]  (!%p3463_p12), %s3836_s11, 4096, %s531_s20, [#allocation12], %s3300_s24, %s3300_s24, %s3301_s19  }
  0x66   : > { %s3305_s15 = smov [#allocation2]   ;;  %s3074_s30 = scalar_lea.hbm %s3828_s3, 6144 }
  0x67   : > { %s456_s17 = sshll.u32 %s3305_s15, 4  ;;  %p3075_p5 = scmp.ne.s32.totalorder %s3828_s3, %s3074_s30  ;;  %s457_s17 = int_to_ptr.vmem [resolvable:$true] %s456_s17 }
  0x68   : > { %p3081_p10 = scmp.lt.u32.totalorder %s3074_s30, %s3828_s3 }
  0x69   : > { %p3077_p6 = pnand %p3075_p5, %p3475_p0 }
  0x6b   : > { %p3078_p9 = pneg %p3077_p6 }
  0x6d   : > { %p3083_p13 = pnand %p3081_p10, %p3078_p9 }
  0x6f   : > { %3086 = shalt.err (!%p3083_p13)
}
  0x70   : > { %s3087_s24 = scalar_lea.vmem %s457_s17, 6144  ;;  %p3095_p4 = scmp.lt.s32.totalorder %s457_s17, %s457_s17 }
  0x71   : > { %p3088_p1 = scmp.ne.s32.totalorder %s457_s17, %s3087_s24  ;;  %p3096_p7 = scmp.lt.s32.totalorder %s3087_s24, %s3087_s24 }
  0x73   : > { %p3090_p2 = pnand %p3088_p1, %p3475_p0  ;;  %p3097_p8 = por %p3096_p7, %p3095_p4 }
  0x75   : > { %p3091_p3 = pneg %p3090_p2 }
  0x77   : > { %p3098_p11 = pnand %p3097_p8, %p3091_p3 }
  0x79   : > { %3101 = shalt.err (!%p3098_p11)
}
  0x7a   : > { %s3306_s19 = smov 384   ;;  %s3307_s20 = smov 24  }
  0x7b   : > { %2861 = dma.hbm_to_vmem [thread:$0]  (!%p3463_p12), %s3828_s3, 6144, %s457_s17, [#allocation3], %s3306_s19, %s3306_s19, %s3307_s20  }
  0x7c   : > { %s3308_s14 = smov [#allocation7]   ;;  %s3309_s27 = smov [#allocation10]  }
  0x7d   : > { %s482_s15 = sshll.u32 %s3308_s14, 4  ;;  %s517_s0 = sshll.u32 %s3309_s27, 4  ;;  %s483_s15 = int_to_ptr.vmem [resolvable:$true] %s482_s15  ;;  %s3557_s0 = int_to_ptr.vmem [resolvable:$true] %s517_s0 }
  0x7e   : > { %s3102_s23 = scalar_lea.hbm %s3830_s5, 2048 }
  0x7f   : > { %p3103_p5 = scmp.ne.s32.totalorder %s3830_s5, %s3102_s23  ;;  %p3109_p10 = scmp.lt.u32.totalorder %s3102_s23, %s3830_s5 }
  0x81   : > { %p3105_p6 = pnand %p3103_p5, %p3475_p0 }
  0x83   : > { %p3106_p9 = pneg %p3105_p6 }
  0x85   : > { %p3111_p13 = pnand %p3109_p10, %p3106_p9 }
  0x87   : > { %3114 = shalt.err (!%p3111_p13)
}
  0x88   : > { %s3115_s18 = scalar_lea.vmem %s483_s15, 2048  ;;  %p3123_p4 = scmp.lt.s32.totalorder %s483_s15, %s483_s15 }
  0x89   : > { %p3116_p1 = scmp.ne.s32.totalorder %s483_s15, %s3115_s18  ;;  %p3124_p7 = scmp.lt.s32.totalorder %s3115_s18, %s3115_s18 }
  0x8b   : > { %p3118_p2 = pnand %p3116_p1, %p3475_p0  ;;  %p3125_p8 = por %p3124_p7, %p3123_p4 }
  0x8d   : > { %p3119_p3 = pneg %p3118_p2 }
  0x8f   : > { %p3126_p11 = pnand %p3125_p8, %p3119_p3 }
  0x91   : > { %3129 = shalt.err (!%p3126_p11)
}
  0x92   : > { %s3878_s14 = smov 128   ;;  %s3130_s13 = scalar_lea.hbm %s3835_s10, 6144 }
  0x93   : > { %2867 = dma.hbm_to_vmem [thread:$0]  (!%p3463_p12), %s3830_s5, 2048, %s483_s15, [#allocation6], %s3878_s14, %s3878_s14, %s3858_s1  }
  0x94   : > { %p3131_p5 = scmp.ne.s32.totalorder %s3835_s10, %s3130_s13  ;;  %p3137_p10 = scmp.lt.u32.totalorder %s3130_s13, %s3835_s10 }
  0x96   : > { %p3133_p6 = pnand %p3131_p5, %p3475_p0 }
  0x98   : > { %p3134_p9 = pneg %p3133_p6 }
  0x9a   : > { %p3139_p13 = pnand %p3137_p10, %p3134_p9 }
  0x9c   : > { %3142 = shalt.err (!%p3139_p13)
}
  0x9d   : > { %s3143_s15 = scalar_lea.vmem %s3557_s0, 6144  ;;  %p3151_p4 = scmp.lt.s32.totalorder %s3557_s0, %s3557_s0 }
  0x9e   : > { %p3144_p1 = scmp.ne.s32.totalorder %s3557_s0, %s3143_s15  ;;  %p3152_p7 = scmp.lt.s32.totalorder %s3143_s15, %s3143_s15 }
  0xa0   : > { %p3146_p2 = pnand %p3144_p1, %p3475_p0  ;;  %p3153_p8 = por %p3152_p7, %p3151_p4 }
  0xa2   : > { %p3147_p3 = pneg %p3146_p2 }
  0xa4   : > { %p3154_p11 = pnand %p3153_p8, %p3147_p3 }
  0xa6   : > { %3157 = shalt.err (!%p3154_p11)
}
  0xa7   : > { %2873 = dma.hbm_to_vmem [thread:$0]  (!%p3463_p12), %s3835_s10, 6144, %s3557_s0, [#allocation9], %s3306_s19, %s3306_s19, %s3307_s20  }
  0xa8   : > { %s3310_s26 = smov [#allocation13]   ;;  %s3158_s16 = scalar_lea.hbm %s3837_s12, 2048 }
  0xa9   : > { %s543_s23 = sshll.u32 %s3310_s26, 4  ;;  %p3159_p5 = scmp.ne.s32.totalorder %s3837_s12, %s3158_s16  ;;  %s544_s23 = int_to_ptr.vmem [resolvable:$true] %s543_s23 }
  0xaa   : > { %p3165_p10 = scmp.lt.u32.totalorder %s3158_s16, %s3837_s12 }
  0xab   : > { %p3161_p6 = pnand %p3159_p5, %p3475_p0 }
  0xad   : > { %p3162_p9 = pneg %p3161_p6 }
  0xaf   : > { %p3167_p13 = pnand %p3165_p10, %p3162_p9 }
  0xb1   : > { %3170 = shalt.err (!%p3167_p13)
}
  0xb2   : > { %s3171_s19 = scalar_lea.vmem %s544_s23, 2048  ;;  %p3179_p4 = scmp.lt.s32.totalorder %s544_s23, %s544_s23 }
  0xb3   : > { %p3172_p1 = scmp.ne.s32.totalorder %s544_s23, %s3171_s19  ;;  %p3180_p7 = scmp.lt.s32.totalorder %s3171_s19, %s3171_s19 }
  0xb5   : > { %p3174_p2 = pnand %p3172_p1, %p3475_p0  ;;  %p3181_p8 = por %p3180_p7, %p3179_p4 }
  0xb7   : > { %p3175_p3 = pneg %p3174_p2 }
  0xb9   : > { %p3182_p11 = pnand %p3181_p8, %p3175_p3 }
  0xbb   : > { %3185 = shalt.err (!%p3182_p11)
}
  0xbc   : > { %s3879_s20 = smov 8   ;;  %p3880_p5 = scmp.ne.s32.totalorder %s3875_s21, 0 }
  0xbd   : > { %2879 = dma.hbm_to_vmem [thread:$0]  (!%p3463_p12), %s3837_s12, 2048, %s544_s23, [#allocation12], %s3878_s14, %s3878_s14, %s3879_s20  }
  0xbe   : > { %584 = sbr.rel (%p3880_p5) target bundleno = 2113 (0x841), region = 84  ;;  %p3881_p0 = scmp.eq.s32.totalorder (!%p3880_p5), %s3427_s28, 0 }
  0xc5   : > { %3259 = dma.done.wait (%p3881_p0), [#allocation3], 6144   ;;  %p3882_p6 = pmov %p3881_p0 }
  0xc6   : > { %p3883_p9 = pmov %p3881_p0 }
  0xc7   : > { %3261 = vsyncadd (%p3882_p6), [#allocation3], 4294961152 }
  0xc8   : > { %3263 = dma.done.wait (%p3883_p9), [#allocation6], 6144   ;;  %p3884_p10 = pmov %p3881_p0 }
  0xc9   : > { %p3885_p13 = pmov %p3881_p0 }
  0xca   : > { %3265 = vsyncadd (%p3884_p10), [#allocation6], 4294961152 }
  0xcb   : > { %3267 = dma.done.wait (%p3885_p13), [#allocation9], 8192   ;;  %p3886_p12 = pmov %p3881_p0 }
  0xcc   : > { %p3887_p1 = pmov %p3881_p0 }
  0xcd   : > { %3269 = vsyncadd (%p3886_p12), [#allocation9], 4294959104 }
  0xce   : > { %3271 = dma.done.wait (%p3887_p1), [#allocation12], 6144   ;;  %p3888_p2 = pmov %p3881_p0 }
  0xcf   : > { %p670_p3 = scmp.lt.s32.totalorder %s3427_s28, 1  ;;  %s3889_s27 = sld [smem:[#allocation31_spill]]  ;;  %vm685_vm0 = vcmask 64512   ;;  %v684_v0 = vld [vmem:[%s3827_s2] sm:$0xff]  ;;  %vm767_vm1 = vcmask 130048   ;;  %v850_v4 = vld [vmem:[#allocation2 + $0x8] sm:$0xff] }
  0xd0   : > { %3273 = vsyncadd (%p3888_p2), [#allocation12], 4294961152  ;;  %2324 = vmatprep.subr.mxu1 %v684_v0  ;;  %s3890_s16 = sld [smem:[#allocation30_spill]]  ;;  %v853_v5 = vld [vmem:[#allocation2 + $0x20] sm:$0xff]  ;;  %v852_v8 = vld [vmem:[#allocation2 + $0x18] sm:$0xff]  ;;  %s3892_s13 = sld [smem:[#allocation33_spill]] }
  0xd1   : > { %s671_s21 = scalar_select %p670_p3, %s3427_s28, 1  ;;  %2325 = vmatpush3.msra.mxu1 %v684_v0  ;;  %v849_v6 = vld [vmem:[#allocation2] sm:$0xff]  ;;  %v2522_v7 = vpack.c.bf16 %v853_v5, %v850_v4  ;;  %v856_v10 = vld [vmem:[#allocation2 + $0x38] sm:$0xff]  ;;  %v859_v11 = vld [vmem:[#allocation2 + $0x50] sm:$0xff] }
  0xd2   : > { %v2524_v9 = vpack.c.bf16 %v852_v8, %v849_v6  ;;  %v855_v12 = vld [vmem:[#allocation2 + $0x30] sm:$0xff]  ;;  %v2526_v13 = vpack.c.bf16 %v859_v11, %v856_v10  ;;  %v858_v14 = vld [vmem:[#allocation2 + $0x48] sm:$0xff]  ;;  %v865_v17 = vld [vmem:[#allocation2 + $0x80] sm:$0xff]  ;;  %s3893_s24 = sld [smem:[#allocation28_spill]]  ;;  %s3894_s19 = sld [smem:[#allocation35_spill]] }
  0xd3   : > { %s2219_s29 = sshll.u32 %s671_s21, 4  ;;  %2523 = vmatprep.subr.bf16.mxu0 %v2522_v7  ;;  %v2528_v15 = vpack.c.bf16 %v858_v14, %v855_v12  ;;  %v862_v16 = vld [vmem:[#allocation2 + $0x68] sm:$0xff]  ;;  %v861_v18 = vld [vmem:[#allocation2 + $0x60] sm:$0xff]  ;;  %v864_v20 = vld [vmem:[#allocation2 + $0x78] sm:$0xff]  ;;  %s3696_s21 = sand.u32 1, %s3288_s25  }
  0xd4   : > { %2525 = vmatpush1.bf16.msra.mxu0 %v2524_v9  ;;  %v2530_v19 = vpack.c.bf16 %v865_v17, %v862_v16  ;;  %v2532_v21 = vpack.c.bf16 %v864_v20, %v861_v18  ;;  %v868_v22 = vld [vmem:[#allocation2 + $0x98] sm:$0xff]  ;;  %v871_v23 = vld [vmem:[#allocation2 + $0xb0] sm:$0xff]  ;;  %v870_v26 = vld [vmem:[#allocation2 + $0xa8] sm:$0xff]  ;;  %v3311_v20 = vmov 0.0   ;;  %s1958_s1 = scalar_lea.sflag [#allocation4], %s3696_s21  ;;  %s3312_s14 = smov [#allocation14]  }
  0xd5   : > { %s679_s30 = scalar_lea.vmem %s3889_s27, %s2219_s29  ;;  %2527 = vmatprep.subr.bf16.mxu0 %v2526_v13  ;;  %v867_v24 = vld [vmem:[#allocation2 + $0x90] sm:$0xff]  ;;  %v2534_v25 = vpack.c.bf16 %v871_v23, %v868_v22  ;;  %v874_v28 = vld [vmem:[#allocation2 + $0xc8] sm:$0xff]  ;;  %v877_v29 = vld [vmem:[#allocation2 + $0xe0] sm:$0xff]  ;;  %961 = vmatprep.mubr.f32.mxu0 %v3311_v20 }
  0xd6   : > { %v682_v1 = vld [vmem:[%s679_s30] sm:$0xff]  ;;  %v683_v2 = vld [vmem:[%s679_s30 + $0x8] sm:$0xff]  ;;  %s3656_s17 = scalar_lea.vmem %s3890_s16, %s2219_s29  ;;  %v2536_v27 = vpack.c.bf16 %v870_v26, %v867_v24  ;;  %v2538_v31 = vpack.c.bf16 %v877_v29, %v874_v28  ;;  %v876_v32 = vld [vmem:[#allocation2 + $0xd8] sm:$0xff]  ;;  %s2185_s29 = sshll.u32 %s3696_s21, 4 }
  0xd7   : > { %2326 = vmatprep.mubr.msk.f32.mxu1 %vm685_vm0, %v682_v1  ;;  %v3659_v3 = vld [vmem:[%s3656_s17] sm:$0xff]  ;;  %v880_v34 = vld [vmem:[#allocation2 + $0xf8] sm:$0xff]  ;;  %v883_v35 = vld [vmem:[#allocation2 + $0x110] sm:$0xff]  ;;  %s3701_s22 = scalar_lea.vmem [#allocation14], %s2185_s29  ;;  %s3891_s30 = sld [smem:[#allocation32_spill]] }
  0xd8   : > { %2327 = vmatmul.mubr.msk.f32.vlgmr.msra.gmra.mrb[0].mxu1 %vm685_vm0, %v683_v2  ;;  %2529 = vmatpush1.bf16.msra.mxu0 %v2528_v15  ;;  %v873_v30 = vld [vmem:[#allocation2 + $0xc0] sm:$0xff]  ;;  %v879_v36 = vld [vmem:[#allocation2 + $0xf0] sm:$0xff]  ;;  %v2542_v37 = vpack.c.bf16 %v883_v35, %v880_v34  ;;  %v882_v38 = vld [vmem:[#allocation2 + $0x108] sm:$0xff]  ;;  %s1976_s16 = sshll.u32 %s3701_s22, 4  ;;  %p3895_p7 = scmp.ne.s32.totalorder %s3893_s24, 0  ;;  %s3730_s16 = int_to_ptr.vmem [resolvable:$true] %s1976_s16 }
  0xd9   : > { %2333 = vmatprep.mubr.msk.f32.mxu1 %vm767_vm1, %v3659_v3  ;;  %2531 = vmatprep.subr.bf16.mxu0 %v2530_v19  ;;  %v2540_v33 = vpack.c.bf16 %v876_v32, %v873_v30  ;;  %v2544_v39 = vpack.c.bf16 %v882_v38, %v879_v36  ;;  %v886_v40 = vld [vmem:[#allocation2 + $0x128] sm:$0xff]  ;;  %v889_v41 = vld [vmem:[#allocation2 + $0x140] sm:$0xff]  ;;  %v888_v44 = vld [vmem:[#allocation2 + $0x138] sm:$0xff]  ;;  %s3186_s0 = scalar_lea.vmem %s3730_s16, 256 }
  0xda   : > { %v885_v42 = vld [vmem:[#allocation2 + $0x120] sm:$0xff]  ;;  %v2546_v43 = vpack.c.bf16 %v889_v41, %v886_v40  ;;  %v892_v46 = vld [vmem:[#allocation2 + $0x158] sm:$0xff]  ;;  %v895_v47 = vld [vmem:[#allocation2 + $0x170] sm:$0xff]  ;;  %p3187_p4 = scmp.ne.s32.totalorder %s3730_s16, %s3186_s0 }
  0xdb   : > { %v2548_v45 = vpack.c.bf16 %v888_v44, %v885_v42  ;;  %v891_v48 = vld [vmem:[#allocation2 + $0x150] sm:$0xff]  ;;  %v2550_v49 = vpack.c.bf16 %v895_v47, %v892_v46  ;;  %v894_v50 = vld [vmem:[#allocation2 + $0x168] sm:$0xff]  ;;  %v857_v58 = vld [vmem:[#allocation2 + $0x40] sm:$0xff] }
  0xdc   : > { %2533 = vmatpush1.bf16.msra.mxu0 %v2532_v21  ;;  %v2552_v51 = vpack.c.bf16 %v894_v50, %v891_v48  ;;  %v851_v52 = vld [vmem:[#allocation2 + $0x10] sm:$0xff]  ;;  %v854_v53 = vld [vmem:[#allocation2 + $0x28] sm:$0xff]  ;;  %v860_v59 = vld [vmem:[#allocation2 + $0x58] sm:$0xff]  ;;  %p3188_p8 = pnand %p3187_p4, %p3895_p7 }
  0xdd   : > { %2535 = vmatprep.subr.bf16.mxu0 %v2534_v25  ;;  %v2554_v57 = vpack.c.bf16 %v854_v53, %v851_v52  ;;  %v3670_v60 = vld [vmem:[%s3656_s17 + $0x8] sm:$0xff]  ;;  %v2558_v61 = vpack.c.bf16 %v860_v59, %v857_v58  ;;  %v863_v62 = vld [vmem:[#allocation2 + $0x70] sm:$0xff]  ;;  %v869_v1 = vld [vmem:[#allocation2 + $0xa0] sm:$0xff]  ;;  %s2221_s17 = sshll.u32 %s3427_s28, 8 }
  0xde   : > { %v866_v63 = vld [vmem:[#allocation2 + $0x88] sm:$0xff]  ;;  %v872_v2 = vld [vmem:[#allocation2 + $0xb8] sm:$0xff]  ;;  %v875_v5 = vld [vmem:[#allocation2 + $0xd0] sm:$0xff]  ;;  %s3738_s20 = scalar_lea.hbm %s3894_s19, %s2221_s17  ;;  %p3189_p11 = pneg %p3188_p8 }
  0xdf   : > { %v2562_v0 = vpack.c.bf16 %v866_v63, %v863_v62  ;;  %v2566_v4 = vpack.c.bf16 %v872_v2, %v869_v1  ;;  %v878_v6 = vld [vmem:[#allocation2 + $0xe8] sm:$0xff]  ;;  %v881_v8 = vld [vmem:[#allocation2 + $0x100] sm:$0xff]  ;;  %v884_v9 = vld [vmem:[#allocation2 + $0x118] sm:$0xff] }
  0xe0   : > { %2537 = vmatpush1.bf16.msra.mxu0 %v2536_v27  ;;  %v2570_v7 = vpack.c.bf16 %v878_v6, %v875_v5  ;;  %v2574_v10 = vpack.c.bf16 %v884_v9, %v881_v8  ;;  %v887_v11 = vld [vmem:[#allocation2 + $0x130] sm:$0xff]  ;;  %v890_v12 = vld [vmem:[#allocation2 + $0x148] sm:$0xff]  ;;  %v893_v14 = vld [vmem:[#allocation2 + $0x160] sm:$0xff] }
  0xe1   : > { %2539 = vmatprep.subr.bf16.mxu0 %v2538_v31  ;;  %v2578_v13 = vpack.c.bf16 %v890_v12, %v887_v11  ;;  %v896_v15 = vld [vmem:[#allocation2 + $0x178] sm:$0xff]  ;;  %v1050_v17 = vld [vmem:[#allocation5 + $0x8] sm:$0xff]  ;;  %v1049_v21 = vld [vmem:[#allocation5] sm:$0xff] }
  0xe2   : > { %v2582_v16 = vpack.c.bf16 %v896_v15, %v893_v14  ;;  %v1052_v18 = vld [vmem:[#allocation5 + $0x18] sm:$0xff]  ;;  %v1051_v22 = vld [vmem:[#allocation5 + $0x10] sm:$0xff]  ;;  %v1054_v23 = vld [vmem:[#allocation5 + $0x28] sm:$0xff] }
  0xe3   : > { %v2586_v19 = vpack.c.bf16 %v1052_v18, %v1050_v17  ;;  %v1056_v24 = vld [vmem:[#allocation5 + $0x38] sm:$0xff]  ;;  %v2588_v25 = vpack.c.bf16 %v1051_v22, %v1049_v21  ;;  %v1053_v28 = vld [vmem:[#allocation5 + $0x20] sm:$0xff]  ;;  %v1055_v29 = vld [vmem:[#allocation5 + $0x30] sm:$0xff] }
  0xe4   : > { %2541 = vmatpush1.bf16.msra.mxu0 %v2540_v33  ;;  %v2590_v27 = vpack.c.bf16 %v1056_v24, %v1054_v23  ;;  %v1058_v31 = vld [vmem:[#allocation5 + $0x48] sm:$0xff]  ;;  %v1060_v32 = vld [vmem:[#allocation5 + $0x58] sm:$0xff]  ;;  %v2592_v33 = vpack.c.bf16 %v1055_v29, %v1053_v28  ;;  %v1057_v35 = vld [vmem:[#allocation5 + $0x40] sm:$0xff] }
  0xe5   : > { %2543 = vmatprep.subr.bf16.mxu0 %v2542_v37  ;;  %v2594_v34 = vpack.c.bf16 %v1060_v32, %v1058_v31  ;;  %v1059_v36 = vld [vmem:[#allocation5 + $0x50] sm:$0xff]  ;;  %v1062_v37 = vld [vmem:[#allocation5 + $0x68] sm:$0xff]  ;;  %v1064_v38 = vld [vmem:[#allocation5 + $0x78] sm:$0xff] }
  0xe6   : > { %v2598_v40 = vpack.c.bf16 %v1064_v38, %v1062_v37  ;;  %v1061_v41 = vld [vmem:[#allocation5 + $0x60] sm:$0xff]  ;;  %v1063_v42 = vld [vmem:[#allocation5 + $0x70] sm:$0xff]  ;;  %v1068_v44 = vld [vmem:[#allocation5 + $0x98] sm:$0xff] }
  0xe7   : > { %v1065_v47 = vld [vmem:[#allocation5 + $0x80] sm:$0xff]  ;;  %v1067_v48 = vld [vmem:[#allocation5 + $0x90] sm:$0xff]  ;;  %v1072_v50 = vld [vmem:[#allocation5 + $0xb8] sm:$0xff] }
  0xe8   : > { %2545 = vmatpush1.bf16.msra.mxu0 %v2544_v39  ;;  %v2596_v39 = vpack.c.bf16 %v1059_v36, %v1057_v35  ;;  %v1069_v53 = vld [vmem:[#allocation5 + $0xa0] sm:$0xff]  ;;  %v1076_v58 = vld [vmem:[#allocation5 + $0xd8] sm:$0xff]  ;;  %v1075_v63 = vld [vmem:[#allocation5 + $0xd0] sm:$0xff] }
  0xe9   : > { %2547 = vmatprep.subr.bf16.mxu0 %v2546_v43  ;;  %v1066_v43 = vld [vmem:[#allocation5 + $0x88] sm:$0xff]  ;;  %v1073_v62 = vld [vmem:[#allocation5 + $0xc0] sm:$0xff]  ;;  %v1080_v1 = vld [vmem:[#allocation5 + $0xf8] sm:$0xff] }
  0xea   : > { %v2602_v46 = vpack.c.bf16 %v1068_v44, %v1066_v43  ;;  %v2612_v2 = vpack.c.bf16 %v1075_v63, %v1073_v62  ;;  %v1077_v5 = vld [vmem:[#allocation5 + $0xe0] sm:$0xff]  ;;  %v1079_v6 = vld [vmem:[#allocation5 + $0xf0] sm:$0xff]  ;;  %v1207_v9 = vld [vmem:[#allocation7 + $0x8] sm:$0xff] }
  0xeb   : > { %v1206_v8 = vld [vmem:[#allocation7] sm:$0xff]  ;;  %v1208_v11 = vld [vmem:[#allocation7 + $0x10] sm:$0xff]  ;;  %v1209_v12 = vld [vmem:[#allocation7 + $0x18] sm:$0xff] }
  0xec   : > { %2549 = vmatpush1.bf16.msra.mxu0 %v2548_v45  ;;  %v2600_v45 = vpack.c.bf16 %v1063_v42, %v1061_v41  ;;  %v1210_v14 = vld [vmem:[#allocation7 + $0x20] sm:$0xff]  ;;  %v1211_v15 = vld [vmem:[#allocation7 + $0x28] sm:$0xff]  ;;  %v1212_v17 = vld [vmem:[#allocation7 + $0x30] sm:$0xff] }
  0xed   : > { %2551 = vmatprep.subr.bf16.mxu0 %v2550_v49  ;;  %v1070_v49 = vld [vmem:[#allocation5 + $0xa8] sm:$0xff]  ;;  %v1213_v18 = vld [vmem:[#allocation7 + $0x38] sm:$0xff]  ;;  %v1214_v21 = vld [vmem:[#allocation7 + $0x40] sm:$0xff] }
  0xee   : > { %v2606_v52 = vpack.c.bf16 %v1072_v50, %v1070_v49  ;;  %v1215_v22 = vld [vmem:[#allocation7 + $0x48] sm:$0xff]  ;;  %v1216_v24 = vld [vmem:[#allocation7 + $0x50] sm:$0xff]  ;;  %v1221_v31 = vld [vmem:[#allocation7 + $0x78] sm:$0xff] }
  0xef   : > { %v2634_v23 = vpack.c.bf16 %v1215_v22, %v1214_v21  ;;  %v1219_v28 = vld [vmem:[#allocation7 + $0x68] sm:$0xff]  ;;  %v1322_v35 = vld [vmem:[#allocation8 + $0x10] sm:$0xff]  ;;  %v1323_v37 = vld [vmem:[#allocation8 + $0x18] sm:$0xff] }
  0xf0   : > { %2553 = vmatpush1.bf16.msra.mxu0 %v2552_v51  ;;  %v2604_v51 = vpack.c.bf16 %v1067_v48, %v1065_v47  ;;  %v2654_v38 = vpack.c.bf16 %v1323_v37, %v1322_v35  ;;  %v2195_v42 = vld [vmem:[%s3831_s6] ss:$0 sm:$0xff]  ;;  %v1331_v21 = vld [vmem:[#allocation8 + $0x58] sm:$0xff] }
  0xf1   : > { %2587 = vmatprep.subr.bf16.mxu0 %v2586_v19  ;;  %v2630_v19 = vpack.c.bf16 %v1213_v18, %v1212_v17  ;;  %v2198_v43 = vld [vmem:[%s3832_s7] ss:$0 sm:$0xff]  ;;  %v1329_v18 = vld [vmem:[#allocation8 + $0x48] sm:$0xff] }
  0xf2   : > { %v1328_v17 = vld [vmem:[#allocation8 + $0x40] sm:$0xff] }
 0x1ab   : > { %v3663_v54 = vpop.f32.mrb[0].mxu1 }
 0x1ac   : > { %v3665_v55 = vpop.f32.mrb[1].mxu1 }
 0x1ad   : > { %v2518_v56 = vpack.c.bf16 %v3663_v54, %v3665_v55 }
 0x1af   : > { %2519 = vmatprep.subr.bf16.mxu1 %v2518_v56 }
 0x1b0   : > { %2521 = vmatpush3.bf16.msra.mxu1 %v2518_v56  ;;  %v1071_v56 = vld [vmem:[#allocation5 + $0xb0] sm:$0xff] }
 0x1b1   : > { %2555 = vmatprep.subr.bf16.mxu1 %v2554_v57  ;;  %v2608_v59 = vpack.c.bf16 %v1071_v56, %v1069_v53 }
 0x1b3   : > { %2334 = vmatmul.mubr.msk.f32.vlgmr.msra.gmra.mrb[2].mxu1 %vm767_vm1, %v3670_v60 }
 0x1b4   : > { %2557 = vmatpush3.bf16.msra.mxu1 %v2554_v57  ;;  %v1074_v57 = vld [vmem:[#allocation5 + $0xc8] sm:$0xff] }
 0x1b5   : > { %2559 = vmatprep.subr.bf16.mxu1 %v2558_v61 }
 0x1b8   : > { %2561 = vmatpush3.bf16.msra.mxu1 %v2558_v61  ;;  %v2610_v61 = vpack.c.bf16 %v1076_v58, %v1074_v57 }
 0x1b9   : > { %2563 = vmatprep.subr.bf16.mxu1 %v2562_v0 }
 0x1bc   : > { %2565 = vmatpush3.bf16.msra.mxu1 %v2562_v0  ;;  %v1078_v0 = vld [vmem:[#allocation5 + $0xe8] sm:$0xff] }
 0x1bd   : > { %2567 = vmatprep.subr.bf16.mxu1 %v2566_v4 }
 0x1c0   : > { %2569 = vmatpush3.bf16.msra.mxu1 %v2566_v4  ;;  %v2614_v4 = vpack.c.bf16 %v1080_v1, %v1078_v0 }
 0x1c1   : > { %2571 = vmatprep.subr.bf16.mxu1 %v2570_v7 }
 0x1c4   : > { %2573 = vmatpush3.bf16.msra.mxu1 %v2570_v7  ;;  %v2616_v7 = vpack.c.bf16 %v1079_v6, %v1077_v5 }
 0x1c5   : > { %2575 = vmatprep.subr.bf16.mxu1 %v2574_v10 }
 0x1c8   : > { %2577 = vmatpush3.bf16.msra.mxu1 %v2574_v10  ;;  %v2618_v10 = vpack.c.bf16 %v1207_v9, %v1206_v8 }
 0x1c9   : > { %2579 = vmatprep.subr.bf16.mxu1 %v2578_v13 }
 0x1cc   : > { %2581 = vmatpush3.bf16.msra.mxu1 %v2578_v13  ;;  %v2622_v13 = vpack.c.bf16 %v1209_v12, %v1208_v11 }
 0x1cd   : > { %2583 = vmatprep.subr.bf16.mxu1 %v2582_v16 }
 0x1d0   : > { %2585 = vmatpush3.bf16.msra.mxu1 %v2582_v16  ;;  %v2626_v16 = vpack.c.bf16 %v1211_v15, %v1210_v14  ;;  %v1326_v14 = vld [vmem:[#allocation8 + $0x30] sm:$0xff]  ;;  %v1327_v15 = vld [vmem:[#allocation8 + $0x38] sm:$0xff] }
 0x1d1   : > { %2619 = vmatprep.subr.bf16.mxu1 %v2618_v10 }
 0x286   : > { %v2335_v26 = vpop.f32.mrb[2].mxu1 }
 0x287   : > { %v840_v30 = vpop.f32.mrb[3].mxu1 }
 0x288   : > { %962 = vmatmul.mubr.f32.vlgmr.msra.gmra.mrb[0].mxu0 %v840_v30  ;;  %2368 = vmatprep.mubr.f32.mxu1 %v840_v30  ;;  %v1220_v30 = vld [vmem:[#allocation7 + $0x70] sm:$0xff] }
 0x289   : > { %2589 = vmatpush1.bf16.msra.mxu0 %v2588_v25  ;;  %2369 = vmatmul.mubr.f32.vlgmr.msra.gmra.mrb[4].mxu1 %v2335_v26  ;;  %v1217_v25 = vld [vmem:[#allocation7 + $0x58] sm:$0xff]  ;;  %v2646_v32 = vpack.c.bf16 %v1221_v31, %v1220_v30 }
 0x28a   : > { %967 = vmatprep.mubr.f32.mxu0 %v3311_v20  ;;  %2591 = vmatprep.subr.bf16.mxu0 %v2590_v27  ;;  %v1218_v27 = vld [vmem:[#allocation7 + $0x60] sm:$0xff] }
 0x28b   : > { %2621 = vmatpush3.bf16.msra.mxu1 %v2618_v10  ;;  %v2642_v29 = vpack.c.bf16 %v1219_v28, %v1218_v27  ;;  %v2201_v27 = vld [vmem:[%s3833_s8] ss:$0 sm:$0xff] }
 0x28c   : > { %968 = vmatmul.mubr.f32.gmra.mrb[2].mxu0 %v2335_v26  ;;  %2623 = vmatprep.subr.bf16.mxu1 %v2622_v13  ;;  %v2638_v26 = vpack.c.bf16 %v1217_v25, %v1216_v24  ;;  %v1335_v25 = vld [vmem:[#allocation8 + $0x78] sm:$0xff] }
 0x28d   : > { %2593 = vmatpush1.bf16.msra.mxu0 %v2592_v33  ;;  %1145 = vmatprep.mubr.f32.mxu0 %v3311_v20  ;;  %v1320_v33 = vld [vmem:[#allocation8] sm:$0xff] }
 0x28e   : > { %2595 = vmatprep.subr.bf16.mxu0 %v2594_v34  ;;  %v1321_v34 = vld [vmem:[#allocation8 + $0x8] sm:$0xff] }
 0x28f   : > { %2625 = vmatpush3.bf16.msra.mxu1 %v2622_v13  ;;  %v2650_v36 = vpack.c.bf16 %v1321_v34, %v1320_v33 }
 0x290   : > { %2627 = vmatprep.subr.bf16.mxu1 %v2626_v16 }
 0x291   : > { %2597 = vmatpush1.bf16.msra.mxu0 %v2596_v39  ;;  %v1324_v39 = vld [vmem:[#allocation8 + $0x20] sm:$0xff] }
 0x292   : > { %2599 = vmatprep.subr.bf16.mxu0 %v2598_v40  ;;  %v1325_v40 = vld [vmem:[#allocation8 + $0x28] sm:$0xff] }
 0x293   : > { %2629 = vmatpush3.bf16.msra.mxu1 %v2626_v16  ;;  %v2658_v41 = vpack.c.bf16 %v1325_v40, %v1324_v39  ;;  %v2662_v16 = vpack.c.bf16 %v1327_v15, %v1326_v14  ;;  %v1491_v39 = vld [vmem:[#allocation10 + $0x28] sm:$0xff]  ;;  %v1492_v14 = vld [vmem:[#allocation10 + $0x30] sm:$0xff] }
 0x294   : > { %2631 = vmatprep.subr.bf16.mxu1 %v2630_v19  ;;  %v1495_v15 = vld [vmem:[#allocation10 + $0x48] sm:$0xff] }
 0x295   : > { %2601 = vmatpush1.bf16.msra.mxu0 %v2600_v45 }
 0x296   : > { %2603 = vmatprep.subr.bf16.mxu0 %v2602_v46 }
 0x297   : > { %2633 = vmatpush3.bf16.msra.mxu1 %v2630_v19  ;;  %v1330_v19 = vld [vmem:[#allocation8 + $0x50] sm:$0xff] }
 0x298   : > { %2635 = vmatprep.subr.bf16.mxu1 %v2634_v23  ;;  %v2670_v22 = vpack.c.bf16 %v1331_v21, %v1330_v19  ;;  %v1498_v19 = vld [vmem:[#allocation10 + $0x60] sm:$0xff]  ;;  %v1501_v21 = vld [vmem:[#allocation10 + $0x78] sm:$0xff] }
 0x299   : > { %2605 = vmatpush1.bf16.msra.mxu0 %v2604_v51 }
 0x29a   : > { %2607 = vmatprep.subr.bf16.mxu0 %v2606_v52 }
 0x29b   : > { %2637 = vmatpush3.bf16.msra.mxu1 %v2634_v23  ;;  %v1333_v23 = vld [vmem:[#allocation8 + $0x68] sm:$0xff] }
 0x29c   : > { %2639 = vmatprep.subr.bf16.mxu1 %v2638_v26 }
 0x29d   : > { %2609 = vmatpush1.bf16.msra.mxu0 %v2608_v59 }
 0x29e   : > { %2611 = vmatprep.subr.bf16.mxu0 %v2610_v61 }
 0x29f   : > { %2641 = vmatpush3.bf16.msra.mxu1 %v2638_v26 }
 0x2a0   : > { %2643 = vmatprep.subr.bf16.mxu1 %v2642_v29 }
 0x2a1   : > { %2613 = vmatpush1.bf16.msra.mxu0 %v2612_v2 }
 0x2a2   : > { %2615 = vmatprep.subr.bf16.mxu0 %v2614_v4 }
 0x2a3   : > { %2645 = vmatpush3.bf16.msra.mxu1 %v2642_v29 }
 0x2a4   : > { %2647 = vmatprep.subr.bf16.mxu1 %v2646_v32 }
 0x2a5   : > { %2617 = vmatpush1.bf16.msra.mxu0 %v2616_v7 }
 0x2a6   : > { %2651 = vmatprep.subr.bf16.mxu0 %v2650_v36 }
 0x2a7   : > { %2649 = vmatpush3.bf16.msra.mxu1 %v2646_v32 }
 0x2a8   : > { %1146 = vmatmul.mubr.f32.vlgmr.msra.gmra.mrb[0].mxu0 %v3665_v55 }
 0x2a9   : > { %1151 = vmatprep.mubr.f32.mxu0 %v3311_v20  ;;  %2653 = vmatpush3.bf16.msra.mxu0 %v2650_v36 }
 0x2aa   : > { %2655 = vmatprep.subr.bf16.mxu0 %v2654_v38 }
 0x2ac   : > { %1152 = vmatmul.mubr.f32.gmra.mrb[2].mxu0 %v3663_v54 }
 0x2ad   : > { %2657 = vmatpush3.bf16.msra.mxu0 %v2654_v38  ;;  %v1488_v38 = vld [vmem:[#allocation10 + $0x10] sm:$0xff] }
 0x2ae   : > { %2659 = vmatprep.subr.bf16.mxu0 %v2658_v41  ;;  %v2718_v40 = vpack.c.bf16 %v1491_v39, %v1488_v38  ;;  %v1526_v38 = vld [vmem:[#allocation10 + $0x140] sm:$0xff] }
 0x2b1   : > { %2661 = vmatpush3.bf16.msra.mxu0 %v2658_v41  ;;  %v1494_v41 = vld [vmem:[#allocation10 + $0x40] sm:$0xff] }
 0x2b2   : > { %2663 = vmatprep.subr.bf16.mxu0 %v2662_v16 }
 0x2b5   : > { %2665 = vmatpush3.bf16.msra.mxu0 %v2662_v16  ;;  %v1499_v16 = vld [vmem:[#allocation10 + $0x68] sm:$0xff] }
 0x37b   : > { %v1147_v44 = vpop.f32.mrb[0].mxu0 }
 0x37c   : > { %v1167_v45 = vadd.f32 %v2195_v42, %v1147_v44  ;;  %v1149_v46 = vpop.f32.mrb[1].mxu0  ;;  %v1500_v44 = vld [vmem:[#allocation10 + $0x70] sm:$0xff] }
 0x37d   : > { %v1190_v47 = vadd.f32 %v2198_v43, %v1149_v46 }
 0x37e   : > { %v2196_v48 = vmul.f32 -1.442695, %v1167_v45  ;;  %v1503_v45 = vld [vmem:[#allocation10 + $0x88] sm:$0xff] }
 0x37f   : > { %v2199_v49 = vmul.f32 -1.442695, %v1190_v47  ;;  %v1153_v50 = vpop.f32.mrb[2].mxu0  ;;  %v2726_v46 = vpack.c.bf16 %v1503_v45, %v1500_v44  ;;  %v1506_v47 = vld [vmem:[#allocation10 + $0xa0] sm:$0xff]  ;;  %v1532_v44 = vld [vmem:[#allocation10 + $0x170] sm:$0xff] }
 0x380   : > { %2950 = vpow2.f32 %v2196_v48  ;;  %v1168_v51 = vadd.f32 %v2195_v42, %v1153_v50  ;;  %v1155_v52 = vpop.f32.mrb[3].mxu0  ;;  %v1497_v42 = vld [vmem:[#allocation10 + $0x58] sm:$0xff]  ;;  %v1512_v50 = vld [vmem:[#allocation10 + $0xd0] sm:$0xff] }
 0x381   : > { %2952 = vpow2.f32 %v2199_v49  ;;  %v1191_v53 = vadd.f32 %v2198_v43, %v1155_v52  ;;  %v2722_v43 = vpack.c.bf16 %v1497_v42, %v1494_v41  ;;  %v1509_v48 = vld [vmem:[#allocation10 + $0xb8] sm:$0xff]  ;;  %v1522_v41 = vld [vmem:[#allocation10 + $0x120] sm:$0xff] }
 0x382   : > { %v2197_v56 = vmul.f32 -1.442695, %v1168_v51  ;;  %v2730_v49 = vpack.c.bf16 %v1509_v48, %v1506_v47  ;;  %v1515_v51 = vld [vmem:[#allocation10 + $0xe8] sm:$0xff]  ;;  %v1525_v42 = vld [vmem:[#allocation10 + $0x138] sm:$0xff]  ;;  %v1528_v47 = vld [vmem:[#allocation10 + $0x150] sm:$0xff] }
 0x383   : > { %v2200_v57 = vmul.f32 -1.442695, %v1191_v53  ;;  %v2734_v52 = vpack.c.bf16 %v1515_v51, %v1512_v50  ;;  %v1518_v53 = vld [vmem:[#allocation10 + $0x100] sm:$0xff]  ;;  %v2712_v45 = vpack.c.bf16 %v1525_v42, %v1522_v41  ;;  %v1531_v48 = vld [vmem:[#allocation10 + $0x168] sm:$0xff]  ;;  %v1689_v51 = vld [vmem:[#allocation11 + $0x18] sm:$0xff] }
 0x384   : > { %2954 = vpow2.f32 %v2197_v56  ;;  %v1521_v56 = vld [vmem:[#allocation10 + $0x118] sm:$0xff]  ;;  %v1687_v50 = vld [vmem:[#allocation11 + $0x8] sm:$0xff]  ;;  %v1845_v42 = vld [vmem:[#allocation13 + $0x10] sm:$0xff] }
 0x385   : > { %2956 = vpow2.f32 %v2200_v57  ;;  %v2738_v57 = vpack.c.bf16 %v1521_v56, %v1518_v53  ;;  %v1686_v53 = vld [vmem:[#allocation11] sm:$0xff]  ;;  %v1688_v56 = vld [vmem:[#allocation11 + $0x10] sm:$0xff] }
 0x38a   : > { %v2951_v58 = vpop.eup %2950 }
 0x38b   : > { %v2953_v59 = vpop.eup %2952  ;;  %v1175_v61 = vadd.f32 1.0, %v2951_v58  ;;  %v1524_v58 = vld [vmem:[#allocation10 + $0x130] sm:$0xff] }
 0x38c   : > { %v1198_v62 = vadd.f32 1.0, %v2953_v59  ;;  %v1527_v59 = vld [vmem:[#allocation10 + $0x148] sm:$0xff] }
 0x38d   : > { %2958 = vrcp.f32 %v1175_v61  ;;  %v2742_v61 = vpack.c.bf16 %v1527_v59, %v1524_v58  ;;  %v1693_v58 = vld [vmem:[#allocation11 + $0x38] sm:$0xff]  ;;  %v2752_v59 = vpack.c.bf16 %v1688_v56, %v1686_v53  ;;  %v1853_v53 = vld [vmem:[#allocation13 + $0x50] sm:$0xff] }
 0x38e   : > { %v2955_v63 = vpop.eup %2954  ;;  %2960 = vrcp.f32 %v1198_v62  ;;  %v1530_v62 = vld [vmem:[#allocation10 + $0x160] sm:$0xff]  ;;  %v1854_v56 = vld [vmem:[#allocation13 + $0x58] sm:$0xff] }
 0x38f   : > { %v2957_v0 = vpop.eup %2956  ;;  %v1176_v1 = vadd.f32 1.0, %v2955_v63  ;;  %v1533_v63 = vld [vmem:[#allocation10 + $0x178] sm:$0xff] }
 0x390   : > { %v1199_v2 = vadd.f32 1.0, %v2957_v0  ;;  %v2746_v0 = vpack.c.bf16 %v1533_v63, %v1530_v62  ;;  %v1690_v63 = vld [vmem:[#allocation11 + $0x20] sm:$0xff] }
 0x391   : > { %2962 = vrcp.f32 %v1176_v1  ;;  %v1487_v1 = vld [vmem:[#allocation10 + $0x8] sm:$0xff] }
 0x392   : > { %2964 = vrcp.f32 %v1199_v2  ;;  %v1490_v2 = vld [vmem:[#allocation10 + $0x20] sm:$0xff] }
 0x397   : > { %v2959_v4 = vpop.eup %2958 }
 0x398   : > { %v2961_v5 = vpop.eup %2960  ;;  %v1312_v6 = vsub.f32 1.0, %v2959_v4 }
 0x399   : > { %v1204_v7 = vmul.f32 %v2961_v5, %v3665_v55 }
 0x39a   : > { %v1314_v8 = vmul.f32 %v1312_v6, %v3665_v55  ;;  %v2666_v55 = vpack.c.bf16 %v1329_v18, %v1328_v17  ;;  %v1502_v17 = vld [vmem:[#allocation10 + $0x80] sm:$0xff]  ;;  %v2692_v18 = vpack.c.bf16 %v1495_v15, %v1492_v14 }
 0x39b   : > { %v2963_v9 = vpop.eup %2962  ;;  %2403 = vmatprep.mubr.f32.mxu1 %v1204_v7  ;;  %v2686_v7 = vpack.c.bf16 %v1490_v2, %v1487_v1  ;;  %v1695_v2 = vld [vmem:[#allocation11 + $0x48] sm:$0xff]  ;;  %v1698_v15 = vld [vmem:[#allocation11 + $0x60] sm:$0xff] }
 0x39c   : > { %v2965_v10 = vpop.eup %2964  ;;  %v1313_v11 = vsub.f32 1.0, %v2963_v9  ;;  %2667 = vmatprep.subr.bf16.mxu0 %v2666_v55 }
 0x39d   : > { %v1205_v12 = vmul.f32 %v2965_v10, %v3663_v54  ;;  %2669 = vmatpush3.bf16.msra.mxu0 %v2666_v55  ;;  %v1493_v10 = vld [vmem:[#allocation10 + $0x38] sm:$0xff]  ;;  %v2694_v55 = vpack.c.bf16 %v1502_v17, %v1499_v16  ;;  %v1700_v16 = vld [vmem:[#allocation11 + $0x70] sm:$0xff]  ;;  %v1703_v17 = vld [vmem:[#allocation11 + $0x88] sm:$0xff] }
 0x39e   : > { %v1315_v13 = vmul.f32 %v3663_v54, %v1313_v11  ;;  %2671 = vmatprep.subr.bf16.mxu0 %v2670_v22  ;;  %v1332_v54 = vld [vmem:[#allocation8 + $0x60] sm:$0xff]  ;;  %v1496_v11 = vld [vmem:[#allocation10 + $0x50] sm:$0xff] }
 0x39f   : > { %2404 = vmatmul.mubr.f32.vlgmr.msra.gmra.mrb[4].mxu1 %v1205_v12  ;;  %v2674_v24 = vpack.c.bf16 %v1333_v23, %v1332_v54  ;;  %v1508_v54 = vld [vmem:[#allocation10 + $0xb0] sm:$0xff]  ;;  %v2696_v23 = vpack.c.bf16 %v1501_v21, %v1498_v19  ;;  %v1702_v21 = vld [vmem:[#allocation11 + $0x80] sm:$0xff] }
 0x3a0   : > { %2445 = vmatprep.mubr.msk.f32.mxu1 %vm767_vm1, %v3659_v3  ;;  %v1334_v3 = vld [vmem:[#allocation8 + $0x70] sm:$0xff] }
 0x3a1   : > { %2673 = vmatpush3.bf16.msra.mxu0 %v2670_v22  ;;  %v2678_v26 = vpack.c.bf16 %v1335_v25, %v1334_v3  ;;  %v1505_v22 = vld [vmem:[#allocation10 + $0x98] sm:$0xff]  ;;  %v1504_v3 = vld [vmem:[#allocation10 + $0x90] sm:$0xff]  ;;  %v1507_v25 = vld [vmem:[#allocation10 + $0xa8] sm:$0xff] }
 0x3a2   : > { %2675 = vmatprep.subr.bf16.mxu0 %v2674_v24 }
 0x3a5   : > { %2677 = vmatpush3.bf16.msra.mxu0 %v2674_v24  ;;  %v2698_v24 = vpack.c.bf16 %v1508_v54, %v1505_v22  ;;  %v1704_v22 = vld [vmem:[#allocation11 + $0x90] sm:$0xff]  ;;  %v1707_v54 = vld [vmem:[#allocation11 + $0xa8] sm:$0xff] }
 0x3a6   : > { %2679 = vmatprep.subr.bf16.mxu0 %v2678_v26 }
 0x3a9   : > { %2681 = vmatpush3.bf16.msra.mxu0 %v2678_v26  ;;  %v1511_v26 = vld [vmem:[#allocation10 + $0xc8] sm:$0xff] }
 0x3aa   : > { %2719 = vmatprep.subr.bf16.mxu0 %v2718_v40 }
 0x472   : > { %v2405_v28 = vpop.f32.mrb[4].mxu1 }
 0x473   : > { %v1307_v29 = vadd.f32 %v2405_v28, %v2201_v27  ;;  %v1288_v30 = vpop.f32.mrb[5].mxu1 }
 0x474   : > { %v1306_v31 = vadd.f32 %v2201_v27, %v1288_v30  ;;  %v1514_v27 = vld [vmem:[#allocation10 + $0xe0] sm:$0xff]  ;;  %v1513_v30 = vld [vmem:[#allocation10 + $0xd8] sm:$0xff] }
 0x475   : > { %2966 = vtanh.f32 %v1307_v29  ;;  %v2702_v28 = vpack.c.bf16 %v1514_v27, %v1511_v26  ;;  %v1510_v29 = vld [vmem:[#allocation10 + $0xc0] sm:$0xff]  ;;  %v1708_v26 = vld [vmem:[#allocation11 + $0xb0] sm:$0xff]  ;;  %v1711_v27 = vld [vmem:[#allocation11 + $0xc8] sm:$0xff] }
 0x476   : > { %2968 = vtanh.f32 %v1306_v31  ;;  %v1517_v31 = vld [vmem:[#allocation10 + $0xf8] sm:$0xff] }
 0x47f   : > { %v2967_v32 = vpop.eup %2966 }
 0x480   : > { %v2969_v33 = vpop.eup %2968  ;;  %v1311_v34 = vmul.f32 %v2967_v32, %v2963_v9  ;;  %v1489_v9 = vld [vmem:[#allocation10 + $0x18] sm:$0xff]  ;;  %v1520_v32 = vld [vmem:[#allocation10 + $0x110] sm:$0xff] }
 0x481   : > { %v1310_v35 = vmul.f32 %v2969_v33, %v2959_v4  ;;  %v2704_v33 = vpack.c.bf16 %v1513_v30, %v1510_v29  ;;  %v1710_v30 = vld [vmem:[#allocation11 + $0xc0] sm:$0xff] }
 0x482   : > { %v1317_v36 = vadd.f32 %v1315_v13, %v1311_v34  ;;  %v2690_v13 = vpack.c.bf16 %v1496_v11, %v1493_v10  ;;  %v2706_v34 = vpack.c.bf16 %v1520_v32, %v1517_v31  ;;  %v1696_v10 = vld [vmem:[#allocation11 + $0x50] sm:$0xff]  ;;  %v1699_v11 = vld [vmem:[#allocation11 + $0x68] sm:$0xff] }
 0x483   : > { %v1316_v37 = vadd.f32 %v1314_v8, %v1310_v35  ;;  %v1486_v8 = vld [vmem:[#allocation10] sm:$0xff]  ;;  %v1516_v35 = vld [vmem:[#allocation10 + $0xf0] sm:$0xff]  ;;  %v1715_v32 = vld [vmem:[#allocation11 + $0xe8] sm:$0xff] }
 0x484   : > { %1319 = vst [vmem:[%s3701_s22 + $0x8] sm:$0xff] %v1317_v36  ;;  %v2688_v12 = vpack.c.bf16 %v1489_v9, %v1486_v8  ;;  %v1694_v9 = vld [vmem:[#allocation11 + $0x40] sm:$0xff]  ;;  %v1712_v31 = vld [vmem:[#allocation11 + $0xd0] sm:$0xff] }
 0x485   : > { %1318 = vst [vmem:[%s3701_s22] sm:$0xff] %v1316_v37  ;;  %2438 = vmatprep.mubr.f32.mxu0 %v1316_v37  ;;  %v1523_v37 = vld [vmem:[#allocation10 + $0x128] sm:$0xff]  ;;  %s3190_s22 = sshll.u32 %s3312_s14, 4  ;;  %s3191_s22 = int_to_ptr.vmem [resolvable:$false] %s3190_s22 }
 0x486   : > { %2439 = vmatmul.mubr.f32.vlgmr.msra.gmra.mrb[4].mxu0 %v1317_v36  ;;  %v1519_v36 = vld [vmem:[#allocation10 + $0x108] sm:$0xff]  ;;  %s3192_s27 = scalar_lea.vmem %s3191_s22, 512  ;;  %p3193_p5 = scmp.lt.s32.totalorder %s3730_s16, %s3191_s22 }
 0x487   : > { %2721 = vmatpush3.bf16.msra.mxu0 %v2718_v40  ;;  %v2708_v39 = vpack.c.bf16 %v1519_v36, %v1516_v35  ;;  %v2710_v40 = vpack.c.bf16 %v1526_v38, %v1523_v37  ;;  %v1714_v36 = vld [vmem:[#allocation11 + $0xe0] sm:$0xff]  ;;  %v1716_v37 = vld [vmem:[#allocation11 + $0xf0] sm:$0xff]  ;;  %p3194_p0 = scmp.lt.s32.totalorder %s3192_s27, %s3186_s0 }
 0x488   : > { %2723 = vmatprep.subr.bf16.mxu0 %v2722_v43  ;;  %v2780_v38 = vpack.c.bf16 %v1716_v37, %v1714_v36 }
 0x489   : > { %p3195_p6 = por %p3194_p0, %p3193_p5 }
 0x48b   : > { %2725 = vmatpush3.bf16.msra.mxu0 %v2722_v43  ;;  %v1529_v43 = vld [vmem:[#allocation10 + $0x158] sm:$0xff]  ;;  %p3196_p9 = pnand %p3195_p6, %p3189_p11 }
 0x48c   : > { %2727 = vmatprep.subr.bf16.mxu0 %v2726_v46 }
 0x48f   : > { %2729 = vmatpush3.bf16.msra.mxu0 %v2726_v46  ;;  %v2714_v46 = vpack.c.bf16 %v1532_v44, %v1529_v43  ;;  %v1846_v43 = vld [vmem:[#allocation13 + $0x18] sm:$0xff] }
 0x490   : > { %2731 = vmatprep.subr.bf16.mxu0 %v2730_v49  ;;  %v2786_v44 = vpack.c.bf16 %v1846_v43, %v1845_v42 }
 0x493   : > { %2733 = vmatpush3.bf16.msra.mxu0 %v2730_v49  ;;  %v2716_v49 = vpack.c.bf16 %v1531_v48, %v1528_v47  ;;  %v1849_v48 = vld [vmem:[#allocation13 + $0x30] sm:$0xff] }
 0x494   : > { %2735 = vmatprep.subr.bf16.mxu0 %v2734_v52 }
 0x497   : > { %2737 = vmatpush3.bf16.msra.mxu0 %v2734_v52  ;;  %v2750_v52 = vpack.c.bf16 %v1689_v51, %v1687_v50  ;;  %v1851_v50 = vld [vmem:[#allocation13 + $0x40] sm:$0xff]  ;;  %v1852_v51 = vld [vmem:[#allocation13 + $0x48] sm:$0xff] }
 0x498   : > { %2739 = vmatprep.subr.bf16.mxu0 %v2738_v57 }
 0x49b   : > { %2741 = vmatpush3.bf16.msra.mxu0 %v2738_v57  ;;  %v1691_v57 = vld [vmem:[#allocation11 + $0x28] sm:$0xff] }
 0x49c   : > { %2743 = vmatprep.subr.bf16.mxu0 %v2742_v61  ;;  %v2754_v62 = vpack.c.bf16 %v1693_v58, %v1691_v57  ;;  %v2802_v57 = vpack.c.bf16 %v1854_v56, %v1853_v53  ;;  %v1855_v58 = vld [vmem:[#allocation13 + $0x60] sm:$0xff] }
 0x49f   : > { %2745 = vmatpush3.bf16.msra.mxu0 %v2742_v61 }
 0x4a0   : > { %2747 = vmatprep.subr.bf16.mxu0 %v2746_v0 }
 0x4a3   : > { %2749 = vmatpush3.bf16.msra.mxu0 %v2746_v0  ;;  %v1692_v0 = vld [vmem:[#allocation11 + $0x30] sm:$0xff] }
 0x559   : > { %v3705_v4 = vpop.f32.mrb[4].mxu0 }
 0x55a   : > { %v3707_v5 = vpop.f32.mrb[5].mxu0 }
 0x55b   : > { %v2682_v6 = vpack.c.bf16 %v3705_v4, %v3707_v5 }
 0x55d   : > { %2683 = vmatprep.subr.bf16.mxu1 %v2682_v6 }
 0x55e   : > { %2685 = vmatpush3.bf16.msra.mxu1 %v2682_v6  ;;  %v1697_v6 = vld [vmem:[#allocation11 + $0x58] sm:$0xff] }
 0x55f   : > { %2687 = vmatprep.subr.bf16.mxu1 %v2686_v7  ;;  %v2756_v7 = vpack.c.bf16 %v1692_v0, %v1690_v63  ;;  %v2758_v8 = vpack.c.bf16 %v1697_v6, %v1695_v2  ;;  %v1858_v63 = vld [vmem:[#allocation13 + $0x78] sm:$0xff]  ;;  %v2207_v2 = vld [vmem:[%s3892_s13] ss:$0 sm:$0xff] }
 0x561   : > { %2446 = vmatmul.mubr.msk.f32.vlgmr.msra.gmra.mrb[6].mxu1 %vm767_vm1, %v3670_v60  ;;  %v2700_v60 = vpack.c.bf16 %v1507_v25, %v1504_v3  ;;  %v1706_v25 = vld [vmem:[#allocation11 + $0xa0] sm:$0xff] }
 0x562   : > { %2689 = vmatpush1.bf16.msra.mxu1 %v2688_v12  ;;  %1598 = vmatprep.mubr.f32.mxu1 %v3311_v20  ;;  %v1701_v12 = vld [vmem:[#allocation11 + $0x78] sm:$0xff] }
 0x563   : > { %2691 = vmatprep.subr.bf16.mxu1 %v2690_v13  ;;  %v2760_v13 = vpack.c.bf16 %v1696_v10, %v1694_v9  ;;  %v2762_v14 = vpack.c.bf16 %v1701_v12, %v1699_v11 }
 0x566   : > { %2693 = vmatpush1.bf16.msra.mxu1 %v2692_v18  ;;  %v1705_v18 = vld [vmem:[#allocation11 + $0x98] sm:$0xff] }
 0x567   : > { %2695 = vmatprep.subr.bf16.mxu1 %v2694_v55  ;;  %v2764_v55 = vpack.c.bf16 %v1700_v16, %v1698_v15  ;;  %v2766_v19 = vpack.c.bf16 %v1705_v18, %v1703_v17 }
 0x56a   : > { %2697 = vmatpush1.bf16.msra.mxu1 %v2696_v23  ;;  %v1709_v23 = vld [vmem:[#allocation11 + $0xb8] sm:$0xff] }
 0x56b   : > { %2699 = vmatprep.subr.bf16.mxu1 %v2698_v24  ;;  %v2768_v24 = vpack.c.bf16 %v1704_v22, %v1702_v21  ;;  %v2770_v3 = vpack.c.bf16 %v1709_v23, %v1707_v54 }
 0x56e   : > { %2701 = vmatpush1.bf16.msra.mxu1 %v2700_v60  ;;  %v1713_v60 = vld [vmem:[#allocation11 + $0xd8] sm:$0xff] }
 0x56f   : > { %2703 = vmatprep.subr.bf16.mxu1 %v2702_v28  ;;  %v2772_v28 = vpack.c.bf16 %v1708_v26, %v1706_v25  ;;  %v2774_v29 = vpack.c.bf16 %v1713_v60, %v1711_v27 }
 0x572   : > { %2705 = vmatpush1.bf16.msra.mxu1 %v2704_v33  ;;  %v1717_v33 = vld [vmem:[#allocation11 + $0xf8] sm:$0xff] }
 0x573   : > { %2707 = vmatprep.subr.bf16.mxu1 %v2706_v34  ;;  %v2776_v34 = vpack.c.bf16 %v1712_v31, %v1710_v30  ;;  %v2778_v35 = vpack.c.bf16 %v1717_v33, %v1715_v32 }
 0x576   : > { %2709 = vmatpush1.bf16.msra.mxu1 %v2708_v39  ;;  %v1843_v39 = vld [vmem:[#allocation13] sm:$0xff] }
 0x577   : > { %2711 = vmatprep.subr.bf16.mxu1 %v2710_v40  ;;  %v1844_v40 = vld [vmem:[#allocation13 + $0x8] sm:$0xff] }
 0x578   : > { %v2782_v41 = vpack.c.bf16 %v1844_v40, %v1843_v39 }
 0x57a   : > { %2713 = vmatpush1.bf16.msra.mxu1 %v2712_v45  ;;  %2783 = vmatprep.subr.bf16.mxu0 %v2782_v41  ;;  %v1847_v45 = vld [vmem:[#allocation13 + $0x20] sm:$0xff] }
 0x57b   : > { %2715 = vmatprep.subr.bf16.mxu1 %v2714_v46  ;;  %v1848_v46 = vld [vmem:[#allocation13 + $0x28] sm:$0xff] }
 0x57c   : > { %v2790_v47 = vpack.c.bf16 %v1848_v46, %v1847_v45 }
 0x57e   : > { %2717 = vmatpush1.bf16.msra.mxu1 %v2716_v49  ;;  %v1850_v49 = vld [vmem:[#allocation13 + $0x38] sm:$0xff] }
 0x57f   : > { %2751 = vmatprep.subr.bf16.mxu1 %v2750_v52  ;;  %v2798_v52 = vpack.c.bf16 %v1852_v51, %v1851_v50 }
 0x634   : > { %v2447_v61 = vpop.f32.mrb[6].mxu1 }
 0x635   : > { %v1477_v1 = vpop.f32.mrb[7].mxu1 }
 0x636   : > { %1599 = vmatmul.mubr.f32.vlgmr.msra.gmra.mrb[8].mxu1 %v1477_v1  ;;  %2480 = vmatprep.mubr.f32.mxu0 %v1477_v1  ;;  %v2204_v1 = vld [vmem:[%s3891_s30] ss:$0 sm:$0xff] }
 0x637   : > { %2753 = vmatpush1.bf16.msra.mxu1 %v2752_v59  ;;  %2481 = vmatmul.mubr.f32.vlgmr.msra.gmra.mrb[6].mxu0 %v2447_v61  ;;  %v1856_v59 = vld [vmem:[#allocation13 + $0x68] sm:$0xff] }
 0x638   : > { %1604 = vmatprep.mubr.f32.mxu1 %v3311_v20  ;;  %2755 = vmatprep.subr.bf16.mxu1 %v2754_v62  ;;  %v1857_v62 = vld [vmem:[#allocation13 + $0x70] sm:$0xff] }
 0x639   : > { %2785 = vmatpush3.bf16.msra.mxu0 %v2782_v41  ;;  %v2810_v0 = vpack.c.bf16 %v1858_v63, %v1857_v62 }
 0x63a   : > { %1605 = vmatmul.mubr.f32.gmra.mrb[10].mxu1 %v2447_v61  ;;  %2787 = vmatprep.subr.bf16.mxu0 %v2786_v44  ;;  %v2806_v61 = vpack.c.bf16 %v1856_v59, %v1855_v58 }
 0x63b   : > { %2757 = vmatpush1.bf16.msra.mxu1 %v2756_v7  ;;  %1782 = vmatprep.mubr.f32.mxu1 %v3311_v20 }
 0x63c   : > { %2759 = vmatprep.subr.bf16.mxu1 %v2758_v8 }
 0x63d   : > { %2789 = vmatpush3.bf16.msra.mxu0 %v2786_v44 }
 0x63e   : > { %2791 = vmatprep.subr.bf16.mxu0 %v2790_v47 }
 0x63f   : > { %2761 = vmatpush1.bf16.msra.mxu1 %v2760_v13 }
 0x640   : > { %2763 = vmatprep.subr.bf16.mxu1 %v2762_v14 }
 0x641   : > { %2793 = vmatpush3.bf16.msra.mxu0 %v2790_v47 }
 0x643   : > { %2765 = vmatpush1.bf16.msra.mxu1 %v2764_v55 }
 0x644   : > { %2767 = vmatprep.subr.bf16.mxu1 %v2766_v19 }
 0x647   : > { %2769 = vmatpush1.bf16.msra.mxu1 %v2768_v24 }
 0x648   : > { %2771 = vmatprep.subr.bf16.mxu1 %v2770_v3 }
 0x64b   : > { %2773 = vmatpush1.bf16.msra.mxu1 %v2772_v28 }
 0x64c   : > { %2775 = vmatprep.subr.bf16.mxu1 %v2774_v29 }
 0x64f   : > { %2777 = vmatpush1.bf16.msra.mxu1 %v2776_v34 }
 0x650   : > { %2779 = vmatprep.subr.bf16.mxu1 %v2778_v35 }
 0x653   : > { %2781 = vmatpush1.bf16.msra.mxu1 %v2780_v38 }
 0x656   : > { %1783 = vmatmul.mubr.f32.vlgmr.msra.gmra.mrb[8].mxu1 %v3707_v5 }
 0x657   : > { %1788 = vmatprep.mubr.f32.mxu1 %v3311_v20  ;;  %v2794_v20 = vpack.c.bf16 %v1850_v49, %v1849_v48 }
 0x659   : > { %2795 = vmatprep.subr.bf16.mxu0 %v2794_v20 }
 0x65a   : > { %1789 = vmatmul.mubr.f32.gmra.mrb[10].mxu1 %v3705_v4  ;;  %2797 = vmatpush3.bf16.msra.mxu0 %v2794_v20 }
 0x65b   : > { %2799 = vmatprep.subr.bf16.mxu0 %v2798_v52 }
 0x65e   : > { %2801 = vmatpush3.bf16.msra.mxu0 %v2798_v52 }
 0x65f   : > { %2803 = vmatprep.subr.bf16.mxu0 %v2802_v57 }
 0x662   : > { %2805 = vmatpush3.bf16.msra.mxu0 %v2802_v57 }
 0x663   : > { %2807 = vmatprep.subr.bf16.mxu0 %v2806_v61 }
 0x666   : > { %2809 = vmatpush3.bf16.msra.mxu0 %v2806_v61 }
 0x667   : > { %2811 = vmatprep.subr.bf16.mxu0 %v2810_v0 }
 0x66a   : > { %2813 = vmatpush3.bf16.msra.mxu0 %v2810_v0 }
 0x729   : > { %v1784_v6 = vpop.f32.mrb[8].mxu1 }
 0x72a   : > { %v1804_v7 = vadd.f32 %v2204_v1, %v1784_v6  ;;  %v1786_v8 = vpop.f32.mrb[9].mxu1 }
 0x72b   : > { %v1827_v9 = vadd.f32 %v2207_v2, %v1786_v8 }
 0x72c   : > { %v2205_v10 = vmul.f32 -1.442695, %v1804_v7 }
 0x72d   : > { %v2208_v11 = vmul.f32 -1.442695, %v1827_v9  ;;  %v1790_v12 = vpop.f32.mrb[10].mxu1 }
 0x72e   : > { %2970 = vpow2.f32 %v2205_v10  ;;  %v1805_v13 = vadd.f32 %v2204_v1, %v1790_v12  ;;  %v1792_v14 = vpop.f32.mrb[11].mxu1 }
 0x72f   : > { %2972 = vpow2.f32 %v2208_v11  ;;  %v1828_v15 = vadd.f32 %v2207_v2, %v1792_v14 }
 0x730   : > { %v2206_v16 = vmul.f32 -1.442695, %v1805_v13 }
 0x731   : > { %v2209_v17 = vmul.f32 -1.442695, %v1828_v15 }
 0x732   : > { %2974 = vpow2.f32 %v2206_v16 }
 0x733   : > { %2976 = vpow2.f32 %v2209_v17 }
 0x738   : > { %v2971_v18 = vpop.eup %2970 }
 0x739   : > { %v2973_v55 = vpop.eup %2972  ;;  %v1812_v19 = vadd.f32 1.0, %v2971_v18 }
 0x73a   : > { %v1835_v21 = vadd.f32 1.0, %v2973_v55 }
 0x73b   : > { %2978 = vrcp.f32 %v1812_v19 }
 0x73c   : > { %v2975_v22 = vpop.eup %2974  ;;  %2980 = vrcp.f32 %v1835_v21 }
 0x73d   : > { %v2977_v54 = vpop.eup %2976  ;;  %v1813_v23 = vadd.f32 1.0, %v2975_v22 }
 0x73e   : > { %v1836_v24 = vadd.f32 1.0, %v2977_v54 }
 0x73f   : > { %2982 = vrcp.f32 %v1813_v23 }
 0x740   : > { %2984 = vrcp.f32 %v1836_v24 }
 0x745   : > { %v2979_v3 = vpop.eup %2978 }
 0x746   : > { %v2981_v25 = vpop.eup %2980  ;;  %v1949_v26 = vsub.f32 1.0, %v2979_v3 }
 0x747   : > { %v1841_v27 = vmul.f32 %v2981_v25, %v3707_v5 }
 0x748   : > { %v1951_v60 = vmul.f32 %v1949_v26, %v3707_v5 }
 0x749   : > { %v2983_v28 = vpop.eup %2982  ;;  %2515 = vmatprep.mubr.f32.mxu0 %v1841_v27 }
 0x74a   : > { %v2985_v29 = vpop.eup %2984  ;;  %v1950_v30 = vsub.f32 1.0, %v2983_v28 }
 0x74b   : > { %v1842_v31 = vmul.f32 %v2985_v29, %v3705_v4 }
 0x74c   : > { %v1952_v32 = vmul.f32 %v3705_v4, %v1950_v30 }
 0x74d   : > { %2516 = vmatmul.mubr.f32.vlgmr.msra.gmra.mrb[6].mxu0 %v1842_v31 }
 0x74e   : > { %3199 = shalt.err (!%p3196_p9)
}
 0x74f   : > { %s3200_s30 = scalar_lea.hbm %s3738_s20, 256  ;;  %s3204_s13 = scalar_lea.hbm %s3894_s19, 512 }
 0x750   : > { %p3201_p10 = scmp.ne.s32.totalorder %s3738_s20, %s3200_s30  ;;  %p3205_p1 = scmp.lt.u32.totalorder %s3738_s20, %s3894_s19 }
 0x751   : > { %p3206_p2 = scmp.lt.u32.totalorder %s3204_s13, %s3200_s30  ;;  %p3208_p4 = scmp.lt.u32.totalorder %s3200_s30, %s3738_s20 }
 0x752   : > { %p3202_p13 = pnand %p3201_p10, %p3895_p7 }
 0x753   : > { %p3207_p3 = por %p3206_p2, %p3205_p1 }
 0x754   : > { %p3203_p12 = pneg %p3202_p13 }
 0x755   : > { %p3209_p8 = por %p3208_p4, %p3207_p3 }
 0x757   : > { %p3210_p11 = pnand %p3209_p8, %p3203_p12 }
 0x759   : > { %3213 = shalt.err (!%p3210_p11)
}
 0x75a   : > { %s3313_s0 = smov 128   ;;  %s3314_s14 = smov 8  }
 0x75b   : > { %2854 = dma.vmem_to_hbm [thread:$0]  (%p3895_p7), %s3730_s16, 256, %s3738_s20, %s1958_s1, %s3313_s0, %s3313_s0, %s3314_s14  }
 0x75c   : > { %s3896_s26 = sld [smem:[#allocation34_spill]]  ;;  %s669_s30 = scalar_lea.vmem [#allocation15], %s2185_s29 }
 0x75d   : > { %s1992_s23 = sshll.u32 %s669_s30, 4  ;;  %s3897_s1 = sld [smem:[#allocation36_spill]]  ;;  %s3772_s23 = int_to_ptr.vmem [resolvable:$true] %s1992_s23 }
 0x75e   : > { %s1963_s29 = scalar_lea.sflag [#allocation16], %s3696_s21  ;;  %s3214_s18 = scalar_lea.vmem %s3772_s23, 256 }
 0x75f   : > { %p3215_p5 = scmp.ne.s32.totalorder %s3772_s23, %s3214_s18  ;;  %s3315_s15 = smov [#allocation15]  }
 0x760   : > { %s3218_s22 = sshll.u32 %s3315_s15, 4  ;;  %s3219_s22 = int_to_ptr.vmem [resolvable:$false] %s3218_s22 }
 0x761   : > { %p3216_p0 = pnand %p3215_p5, %p3895_p7  ;;  %s3220_s27 = scalar_lea.vmem %s3219_s22, 512 }
 0x762   : > { %v2210_v4 = vld [vmem:[%s3896_s26] ss:$0 sm:$0xff]  ;;  %p3221_p9 = scmp.lt.s32.totalorder %s3772_s23, %s3219_s22  ;;  %p3222_p10 = scmp.lt.s32.totalorder %s3220_s27, %s3214_s18 }
 0x763   : > { %s3779_s13 = scalar_lea.hbm %s3897_s1, %s2221_s17  ;;  %p3217_p6 = pneg %p3216_p0 }
 0x764   : > { %p3223_p13 = por %p3222_p10, %p3221_p9 }
 0x766   : > { %p3224_p12 = pnand %p3223_p13, %p3217_p6 }
 0x820   : > { %v2517_v5 = vpop.f32.mrb[6].mxu0 }
 0x821   : > { %v1944_v33 = vadd.f32 %v2517_v5, %v2210_v4  ;;  %v1925_v34 = vpop.f32.mrb[7].mxu0 }
 0x822   : > { %v1943_v35 = vadd.f32 %v2210_v4, %v1925_v34 }
 0x823   : > { %2986 = vtanh.f32 %v1944_v33 }
 0x824   : > { %2988 = vtanh.f32 %v1943_v35 }
 0x82d   : > { %v2987_v36 = vpop.eup %2986 }
 0x82e   : > { %v2989_v37 = vpop.eup %2988  ;;  %v1948_v38 = vmul.f32 %v2987_v36, %v2983_v28 }
 0x82f   : > { %v1947_v39 = vmul.f32 %v2989_v37, %v2979_v3 }
 0x830   : > { %v1954_v40 = vadd.f32 %v1952_v32, %v1948_v38 }
 0x831   : > { %v1953_v41 = vadd.f32 %v1951_v60, %v1947_v39 }
 0x832   : > { %1956 = vst [vmem:[%s669_s30 + $0x8] sm:$0xff] %v1954_v40 }
 0x833   : > { %1955 = vst [vmem:[%s669_s30] sm:$0xff] %v1953_v41 }
 0x834   : > { %3227 = shalt.err (!%p3224_p12)
}
 0x835   : > { %s3228_s28 = scalar_lea.hbm %s3779_s13, 256  ;;  %s3232_s30 = scalar_lea.hbm %s3897_s1, 512 }
 0x836   : > { %p3229_p1 = scmp.ne.s32.totalorder %s3779_s13, %s3228_s28  ;;  %p3233_p4 = scmp.lt.u32.totalorder %s3779_s13, %s3897_s1 }
 0x837   : > { %p3234_p8 = scmp.lt.u32.totalorder %s3232_s30, %s3228_s28  ;;  %p3236_p5 = scmp.lt.u32.totalorder %s3228_s28, %s3779_s13 }
 0x838   : > { %p3230_p2 = pnand %p3229_p1, %p3895_p7 }
 0x839   : > { %p3235_p11 = por %p3234_p8, %p3233_p4 }
 0x83a   : > { %p3231_p3 = pneg %p3230_p2 }
 0x83b   : > { %p3237_p0 = por %p3236_p5, %p3235_p11 }
 0x83d   : > { %p3238_p6 = pnand %p3237_p0, %p3231_p3 }
 0x83f   : > { %3241 = shalt.err (!%p3238_p6)
}
 0x840   : > { %2855 = dma.vmem_to_hbm [thread:$0]  (%p3895_p7), %s3772_s23, 256, %s3779_s13, %s1963_s29, %s3313_s0, %s3313_s0, %s3314_s14  }
 0x841 PF: > { %s3898_s18 = sld [smem:[#allocation25_spill]]  ;;  %s3899_s15 = sld [smem:[#allocation23_spill]] }
 0x842   : > { %s3900_s22 = sld [smem:[#allocation29_spill]] }
 0x847   : > { %p2901_p9 = scmp.ge.s32.totalorder %s3898_s18, 2  ;;  %s2007_s27 = sand.u32 1, %s3899_s15  }
 0x848   : > { %p3901_p10 = scmp.ne.s32.totalorder %s3900_s22, 0  ;;  %s2008_s28 = scalar_lea.sflag [#allocation4], %s2007_s27 }
 0x84a   : > { %p2881_p13 = pnand %p2901_p9, %p3901_p10 }
 0x84c   : > { %3275 = dma.done.wait (!%p2881_p13), %s2008_s28, 256  }
 0x84d   : > { %3277 = vsyncadd (!%p2881_p13), %s2008_s28, 4294967040  ;;  %s2017_s24 = scalar_lea.sflag [#allocation16], %s2007_s27 }
 0x84e   : > { %3279 = dma.done.wait (!%p2881_p13), %s2017_s24, 256  }
 0x84f   : > { %3281 = vsyncadd (!%p2881_p13), %s2017_s24, 4294967040  ;;  %s3902_s27 = sld [smem:[#allocation26_spill]]  ;;  %s3903_s21 = sld [smem:[#allocation24_spill]] }
 0x850   : > { %s3904_s26 = sld [smem:[#allocation27_spill]]  ;;  %s3905_s24 = smov %s3288_s25 }
 0x855   : > { %p35_p7 = scmp.ge.s32.totalorder %s3902_s27, 4   ;;  %s3906_s25 = smov %s3903_s21 }
 0x857   :  { %37 = sbr.rel (!%p35_p7) target bundleno = 17 (0x11), region = 168 }
 0x85e   :  { %2022 = vsyncpa [#allocation3], 1 }
 0x85f   :  { %2024 = vsyncpa [#allocation3 + $0x1], 1 }
 0x860   :  { %2025 = vsyncpa [#allocation6], 1 }
 0x861   :  { %2026 = vsyncpa [#allocation9], 1 }
 0x862   :  { %2027 = vsyncpa [#allocation12], 1 }
 0x863   :  { %2028 = vsyncpa [#allocation4], 1 }
 0x864   :  { %2030 = vsyncpa [#allocation4 + $0x1], 1 }
 0x865   :  { %2031 = vsyncpa [#allocation16], 1 }
 0x866   :  { %2033 = vsyncpa [#allocation16 + $0x1], 1 }

</bundles_post_ra>
